<compile_context>
chip_gen: v5e
topology: v5e:2x2
jax: 0.10.0
libtpu: 0.0.40
codegen_flags: <defaults>
</compile_context>

<pallas_src>
import functools

import jax
import jax.numpy as jnp
from jax import lax
from jax.experimental import pallas as pl
from jax.experimental.pallas import tpu as pltpu

EPS = 1e-6  # GeneralizedRelationalConv.eps

_VMEM_SPEC = pl.BlockSpec(memory_space=pltpu.MemorySpace.VMEM)
_MLP_PARAMS = pltpu.CompilerParams(vmem_limit_bytes=32 * 1024 * 1024)


# --------------------------------------------------------------------------
# Pallas kernels
# --------------------------------------------------------------------------
def _nbf_layers_kernel(dst_ref,                       # SMEM (E,) int32  edge node_out
                       bnd_ref, gin_ref, aout_ref, nodec_ref, red_ref,
                       wx_ref, wa_ref, ws_ref, wsi_ref, b_ref,
                       out_ref,
                       x_scr, msg_scr, mx_scr, mn_scr,
                       *, n_edges):
    """All GeneralizedRelationalConv layers; grid axis 0 = layer index."""
    l = pl.program_id(0)

    @pl.when(l == 0)
    def _init():
        x_scr[...] = bnd_ref[...]                     # layer-0 input = boundary

    x = x_scr[...]                                    # (N, B*D) f32  layer input
    bnd = bnd_ref[...]                                # (N, B*D) f32  self-loop message
    inv_cnt = nodec_ref[:, 0:1]                       # 1 / (in_deg + 1)
    s_amp = nodec_ref[:, 1:2]                         # log-degree scale
    s_att = nodec_ref[:, 2:3]                         # 1 / clamp(scale, 1e-2)

    # ---- DistMult message: source gather via bf16 one-hot matmul (MXU) ----
    src = jnp.dot(gin_ref[...], x.astype(jnp.bfloat16),
                  preferred_element_type=jnp.float32)                 # (Ep, B*D)
    msg = red_ref[...] * src                                          # f32 messages
    msg_scr[...] = msg

    # ---- PNA sum / sq-sum via bf16 scatter matmul (+ self-loop boundary) ----
    A = aout_ref[...]                                                 # (N, Ep) bf16
    sum1 = jnp.dot(A, msg.astype(jnp.bfloat16),
                   preferred_element_type=jnp.float32) + bnd
    sum2 = jnp.dot(A, (msg * msg).astype(jnp.bfloat16),
                   preferred_element_type=jnp.float32) + bnd * bnd
    mean = sum1 * inv_cnt
    sq_mean = sum2 * inv_cnt
    std = jnp.sqrt(jnp.maximum(sq_mean - mean * mean, EPS))

    # ---- PNA max / min: true index-based scatter over edges (O(E*B*D)) ----
    mx_scr[...] = bnd                                 # self-loop message seeds accumulators
    mn_scr[...] = bnd

    def scatter_body(e, carry):
        d = dst_ref[e]
        m = msg_scr[pl.ds(e, 1), :]
        mx_scr[pl.ds(d, 1), :] = jnp.maximum(mx_scr[pl.ds(d, 1), :], m)
        mn_scr[pl.ds(d, 1), :] = jnp.minimum(mn_scr[pl.ds(d, 1), :], m)
        return carry

    lax.fori_loop(0, n_edges, scatter_body, 0)
    mx = mx_scr[...]
    mn = mn_scr[...]

    # ---- combine Linear + ReLU; degree scales folded post-matmul ----------
    # diag(s) * M @ W == s * (M @ W)  (s is per-node), so no scaled copies of
    # the aggregates are ever materialized.
    agg = jnp.concatenate([mean, mx, mn, std], axis=-1).astype(jnp.bfloat16)
    out = jnp.dot(x.astype(jnp.bfloat16), wx_ref[...],
                  preferred_element_type=jnp.float32)
    out += jnp.dot(agg, wa_ref[...], preferred_element_type=jnp.float32)
    out += s_amp * jnp.dot(agg, ws_ref[...], preferred_element_type=jnp.float32)
    out += s_att * jnp.dot(agg, wsi_ref[...], preferred_element_type=jnp.float32)
    out = jnp.maximum(out + b_ref[...], 0.0)          # activation='relu'

    x_scr[...] = out                                  # carry to next layer

    @pl.when(l == pl.num_programs(0) - 1)
    def _finalize():
        out_ref[...] = out


def _mlp_kernel(x_ref, w1_ref, b1_ref, w2_ref, b2_ref, o_ref):
    """2-layer scoring MLP: Linear -> ReLU -> Linear(F->1)."""
    h = jnp.dot(x_ref[...].astype(jnp.bfloat16), w1_ref[...],
                preferred_element_type=jnp.float32) + b1_ref[...]
    h = jnp.maximum(h, 0.0)
    # final Linear(F, 1) as VPU multiply + lane reduction (no 1-column MXU pass)
    o = jnp.sum(h * w2_ref[...], axis=-1, keepdims=True) + b2_ref[...]
    o_ref[...] = o.astype(o_ref.dtype)


# --------------------------------------------------------------------------
# Pallas wrappers
# --------------------------------------------------------------------------
def nbf_layers(dst, bnd_st, consts, red_all, w_x_all, w_agg_all, w_s_all,
               w_si_all, b_all):
    N, BD = bnd_st.shape
    L, Ep, _ = red_all.shape
    BDo = w_x_all.shape[-1]
    n_edges = int(dst.shape[0])
    kernel = functools.partial(_nbf_layers_kernel, n_edges=n_edges)

    grid_spec = pltpu.PrefetchScalarGridSpec(
        num_scalar_prefetch=1,                        # dst -> SMEM
        grid=(L,),
        in_specs=[
            pl.BlockSpec((N, BD), lambda l, d: (0, 0)),             # boundary (resident)
            pl.BlockSpec((Ep, N), lambda l, d: (0, 0)),             # G_in   (resident)
            pl.BlockSpec((N, Ep), lambda l, d: (0, 0)),             # A_out  (resident)
            pl.BlockSpec((N, 8), lambda l, d: (0, 0)),              # per-node scalars
            pl.BlockSpec((None, Ep, BD), lambda l, d: (l, 0, 0)),   # per-edge relation emb
            pl.BlockSpec((None, BD, BDo), lambda l, d: (l, 0, 0)),  # W_x
            pl.BlockSpec((None, 4 * BD, BDo), lambda l, d: (l, 0, 0)),  # W_agg
            pl.BlockSpec((None, 4 * BD, BDo), lambda l, d: (l, 0, 0)),  # W_scale
            pl.BlockSpec((None, 4 * BD, BDo), lambda l, d: (l, 0, 0)),  # W_iscale
            pl.BlockSpec((None, 1, BDo), lambda l, d: (l, 0, 0)),       # bias
        ],
        out_specs=pl.BlockSpec((N, BDo), lambda l, d: (0, 0)),
        scratch_shapes=[
            pltpu.VMEM((N, BD), jnp.float32),         # layer-input carry
            pltpu.VMEM((Ep, BD), jnp.float32),        # messages
            pltpu.VMEM((N, BD), jnp.float32),         # running max
            pltpu.VMEM((N, BD), jnp.float32),         # running min
        ],
    )
    return pl.pallas_call(
        kernel,
        out_shape=jax.ShapeDtypeStruct((N, BDo), jnp.float32),
        grid_spec=grid_spec,
        compiler_params=pltpu.CompilerParams(
            dimension_semantics=("arbitrary",),
            vmem_limit_bytes=32 * 1024 * 1024),
    )(dst, bnd_st, consts["G_in"], consts["A_out"], consts["nodec"],
      red_all, w_x_all, w_agg_all, w_s_all, w_si_all, b_all)


def mlp_score(feat, w1t, b1, w2_row, b2):
    R = feat.shape[0]
    return pl.pallas_call(
        _mlp_kernel,
        out_shape=jax.ShapeDtypeStruct((R, 1), jnp.float32),
        in_specs=[_VMEM_SPEC] * 5,
        out_specs=_VMEM_SPEC,
        compiler_params=_MLP_PARAMS,
    )(feat, w1t, b1, w2_row, b2)


# --------------------------------------------------------------------------
# JAX glue: graph constants, parameters, full forward
# --------------------------------------------------------------------------
def build_graph_constants(edge_list_u, num_node):
    """Incidence matrices (bf16), per-node scalars, and SMEM edge indices."""
    E = int(edge_list_u.shape[0])
    Ep = max(8, ((E + 7) // 8) * 8)
    node_in = edge_list_u[:, 0]
    node_out = edge_list_u[:, 1]
    edge_rel = edge_list_u[:, 2]

    e_ids = jnp.arange(E)
    G_in = jnp.zeros((Ep, num_node), jnp.float32).at[e_ids, node_in].set(1.0)
    A_out = jnp.zeros((num_node, Ep), jnp.float32).at[node_out, e_ids].set(1.0)

    in_deg = jnp.zeros((num_node, 1), jnp.float32).at[node_out, 0].add(1.0)
    inv_cnt = 1.0 / (in_deg + 1.0)                    # messages per node incl. self-loop
    scale = jnp.log(in_deg + 1.0)                     # log(graph.degree_out + 1)
    scale = scale / jnp.mean(scale)
    s_att = 1.0 / jnp.maximum(scale, 1e-2)
    nodec = jnp.concatenate(
        [inv_cnt, scale, s_att, jnp.zeros((num_node, 5), jnp.float32)], axis=1)

    return dict(G_in=G_in.astype(jnp.bfloat16),        # one-hot values exact in bf16
                A_out=A_out.astype(jnp.bfloat16),
                nodec=nodec,
                dst=node_out.astype(jnp.int32),        # scatter indices (scalar prefetch)
                edge_rel=edge_rel,
                Ep=Ep)


def init_params(key, input_dim, hidden_dims, num_relation, batch_size,
                num_mlp_layer=2):
    """Synthetic parameters in PyTorch layouts, pre-transformed for the kernels.

    All combine-weight re-layout / block-diag-over-batch construction and dtype
    casting is hoisted here so nbfnet_forward does no parameter-only work.
    """
    dims = [input_dim] + list(hidden_dims)
    assert all(d == dims[0] for d in dims), "fused layer-grid kernel assumes uniform dims"
    B = batch_size
    twoR = 2 * num_relation
    ks = iter(jax.random.split(key, 4 * len(hidden_dims) + 8))

    def nrm(shape, scale=0.1):
        return jax.random.normal(next(ks), shape, jnp.float32) * scale

    eyeB = jnp.eye(B, dtype=jnp.float32)

    def block_diag(blocks):           # (k, din, dout) -> (k*B*din, B*dout)
        k, din, dout = blocks.shape
        return jnp.einsum("kdo,bc->kbdco", blocks, eyeB).reshape(k * B * din, B * dout)

    params = {"query_emb": nrm((twoR, input_dim))}     # nn.Embedding(2R, input_dim)

    rel_Ws, rel_bs, WXs, WAs, WSs, WSIs, bs = [], [], [], [], [], [], []
    for i in range(len(dims) - 1):
        din, dout = dims[i], dims[i + 1]
        rel_Ws.append(nrm((twoR * din, input_dim)))    # relation_linear weight (out, in)
        rel_bs.append(nrm((twoR * din,)))
        comb_W = nrm((dout, 13 * din))                 # combine Linear weight (out, in)
        comb_b = nrm((dout,))
        # torch column layout: [input(din)] + per d: [ (mean,max,min,std) x (1,s,1/s) ]
        Wt = comb_W.T                                  # (13*din, dout)
        W_x = Wt[:din]
        rest = Wt[din:].reshape(din, 4, 3, dout).transpose(1, 2, 0, 3)  # (agg, scale, din, dout)
        WXs.append(block_diag(W_x[None]).astype(jnp.bfloat16))
        WAs.append(block_diag(rest[:, 0]).astype(jnp.bfloat16))
        WSs.append(block_diag(rest[:, 1]).astype(jnp.bfloat16))
        WSIs.append(block_diag(rest[:, 2]).astype(jnp.bfloat16))
        bs.append(jnp.tile(comb_b.reshape(1, dout), (1, B)))

    params["rel_W"] = rel_Ws
    params["rel_b"] = rel_bs
    params["W_x_all"] = jnp.stack(WXs)                 # (L, B*D, B*D) bf16
    params["W_agg_all"] = jnp.stack(WAs)               # (L, 4*B*D, B*D) bf16
    params["W_scale_all"] = jnp.stack(WSs)
    params["W_iscale_all"] = jnp.stack(WSIs)
    params["b_all"] = jnp.stack(bs)                    # (L, 1, B*D)

    feat = hidden_dims[-1] + input_dim                 # concat_hidden=False
    W1 = nrm((feat, feat)); b1 = nrm((feat,))
    W2 = nrm((1, feat));    b2 = nrm((1,))
    params["mlp_W1t"] = W1.T.astype(jnp.bfloat16)
    params["mlp_b1"] = b1.reshape(1, feat)
    params["mlp_w2_row"] = W2.reshape(1, feat)
    params["mlp_b2"] = b2.reshape(1, 1)
    return params


def nbfnet_forward(params, edge_list, num_node, num_relation,
                   h_index, t_index, r_index):
    """Forward pass of NeuralBellmanFordNetwork (all_loss=None, symmetric=False,
    short_cut=False, concat_hidden=False, layer_norm=False, dependent=True)."""
    shape = h_index.shape
    B = shape[0]

    # TODO(synk): remove_easy_edges (graph.match) only runs when all_loss is not None; skipped.
    # graph.undirected(add_inverse=True)
    rev = jnp.stack([edge_list[:, 1], edge_list[:, 0], edge_list[:, 2] + num_relation], axis=-1)
    edge_list_u = jnp.concatenate([edge_list, rev], axis=0)

    # negative_sample_to_tail
    is_t_neg = jnp.all(h_index == h_index[:, :1], axis=-1, keepdims=True)
    h_new = jnp.where(is_t_neg, h_index, t_index)
    t_new = jnp.where(is_t_neg, t_index, h_index)
    r_new = jnp.where(is_t_neg, r_index, r_index + num_relation)

    consts = build_graph_constants(edge_list_u, num_node)
    E = int(edge_list_u.shape[0])
    Ep = consts["Ep"]
    twoR = 2 * num_relation

    # ---- bellmanford ----
    h_vec = h_new[:, 0]
    r_vec = r_new[:, 0]
    query = params["query_emb"][r_vec]                               # (B, Din)
    Din = query.shape[-1]
    boundary = jnp.zeros((B, num_node, Din), jnp.float32)
    boundary = boundary.at[jnp.arange(B), h_vec, :].add(query)       # scatter_add
    bnd_st = boundary.transpose(1, 0, 2).reshape(num_node, B * Din)  # lane-stacked

    # per-layer, per-edge relation embeddings (dependent=True) gathered in glue
    edge_rel = consts["edge_rel"]
    red_layers = []
    for rel_W, rel_b in zip(params["rel_W"], params["rel_b"]):
        rel3 = (query @ rel_W.T + rel_b).reshape(B, twoR, Din)
        red_e = rel3[:, edge_rel, :]                                 # (B, E, Din)
        red_st = red_e.transpose(1, 0, 2).reshape(E, B * Din)
        red_layers.append(jnp.pad(red_st, ((0, Ep - E), (0, 0))))
    red_all = jnp.stack(red_layers)                                  # (L, Ep, B*Din)

    x_final = nbf_layers(consts["dst"], bnd_st, consts, red_all,
                         params["W_x_all"], params["W_agg_all"],
                         params["W_scale_all"], params["W_iscale_all"],
                         params["b_all"])                            # (N, B*Dout)

    # ---- gather node features at t_index (lane-stacked layout, no full transpose) ----
    Dout = params["W_x_all"].shape[-1] // B
    num_neg = t_new.shape[1]
    rows = x_final[t_new.reshape(-1)].reshape(B, num_neg, B, Dout)
    eyeB = jnp.eye(B, dtype=x_final.dtype)
    layer_feat = jnp.einsum("bjcd,bc->bjd", rows, eyeB)              # (B, NEG, Dout)
    node_q = jnp.broadcast_to(query[:, None, :], (B, num_neg, Din))
    feat = jnp.concatenate([layer_feat, node_q], axis=-1)            # (B, NEG, Dout+Din)
    F = feat.shape[-1]

    score = mlp_score(feat.reshape(-1, F), params["mlp_W1t"], params["mlp_b1"],
                      params["mlp_w2_row"], params["mlp_b2"])
    return score.reshape(shape)


# --------------------------------------------------------------------------
if __name__ == "__main__":
    key = jax.random.PRNGKey(0)
    N, R = 16, 3                 # num_node, num_relation
    B, NEG = 4, 8                # batch, negatives per query
    Din, hidden_dims = 32, [32, 32]
    E0 = 28                      # directed edges before undirected augmentation

    ks = jax.random.split(key, 8)
    heads = jax.random.randint(ks[0], (E0,), 0, N, dtype=jnp.int32)
    tails = jax.random.randint(ks[1], (E0,), 0, N, dtype=jnp.int32)
    rels = jax.random.randint(ks[2], (E0,), 0, R, dtype=jnp.int32)
    edge_list = jnp.stack([heads, tails, rels], axis=-1)

    h_index = jnp.tile(jax.random.randint(ks[3], (B, 1), 0, N, dtype=jnp.int32), (1, NEG))
    t_index = jax.random.randint(ks[4], (B, NEG), 0, N, dtype=jnp.int32)
    r_index = jnp.tile(jax.random.randint(ks[5], (B, 1), 0, R, dtype=jnp.int32), (1, NEG))

    # forward-pass preconditions from the PyTorch module
    assert bool((h_index[:, :1] == h_index).all()) and bool((r_index[:, :1] == r_index).all())

    params = init_params(ks[6], Din, hidden_dims, R, batch_size=B)

    score = nbfnet_forward(params, edge_list, N, R, h_index, t_index, r_index)
    score = jax.block_until_ready(score)
    assert score.shape == (B, NEG) and score.dtype == jnp.float32
    assert bool(jnp.all(jnp.isfinite(score)))
    print("KERNEL_OK")
</pallas_src>

<mosaic_0001>
module attributes {stable_mosaic.version = 11 : i64} {
  func.func @_nbf_layers_kernel(%arg0: i32, %arg1: memref<56xi32, #tpu.memory_space<smem>>, %arg2: memref<16x128xf32, #tpu.memory_space<vmem>>, %arg3: memref<56x16xbf16, #tpu.memory_space<vmem>>, %arg4: memref<16x56xbf16, #tpu.memory_space<vmem>>, %arg5: memref<16x8xf32, #tpu.memory_space<vmem>>, %arg6: memref<1x56x128xf32, #tpu.memory_space<vmem>>, %arg7: memref<1x128x128xbf16, #tpu.memory_space<vmem>>, %arg8: memref<1x512x128xbf16, #tpu.memory_space<vmem>>, %arg9: memref<1x512x128xbf16, #tpu.memory_space<vmem>>, %arg10: memref<1x512x128xbf16, #tpu.memory_space<vmem>>, %arg11: memref<1x1x128xf32, #tpu.memory_space<vmem>>, %arg12: memref<16x128xf32, #tpu.memory_space<vmem>>, %arg13: memref<16x128xf32, #tpu.memory_space<vmem>>, %arg14: memref<56x128xf32, #tpu.memory_space<vmem>>, %arg15: memref<16x128xf32, #tpu.memory_space<vmem>>, %arg16: memref<16x128xf32, #tpu.memory_space<vmem>>) attributes {dimension_semantics = [#tpu.dimension_semantics<arbitrary>], iteration_bounds = array<i64: 2>, scalar_prefetch = 1 : i64, scratch_operands = 4 : i64, tpu.core_type = #tpu.core_type<tc>, window_params = [{pipeline_mode = #tpu.pipeline_mode<synchronous>, transform_indices = @transform_0, window_bounds = array<i64: 16, 128>}, {pipeline_mode = #tpu.pipeline_mode<synchronous>, transform_indices = @transform_1, window_bounds = array<i64: 56, 16>}, {pipeline_mode = #tpu.pipeline_mode<synchronous>, transform_indices = @transform_2, window_bounds = array<i64: 16, 56>}, {pipeline_mode = #tpu.pipeline_mode<synchronous>, transform_indices = @transform_3, window_bounds = array<i64: 16, 8>}, {transform_indices = @transform_4, window_bounds = array<i64: 1, 56, 128>}, {transform_indices = @transform_5, window_bounds = array<i64: 1, 128, 128>}, {transform_indices = @transform_6, window_bounds = array<i64: 1, 512, 128>}, {transform_indices = @transform_7, window_bounds = array<i64: 1, 512, 128>}, {transform_indices = @transform_8, window_bounds = array<i64: 1, 512, 128>}, {transform_indices = @transform_9, window_bounds = array<i64: 1, 1, 128>}, {pipeline_mode = #tpu.pipeline_mode<synchronous>, transform_indices = @transform_10, window_bounds = array<i64: 16, 128>}]} {
    %c0_i32 = arith.constant 0 : i32
    %0 = arith.cmpi eq, %arg0, %c0_i32 : i32
    %1 = arith.extui %0 : i1 to i32
    %c0_i32_0 = arith.constant 0 : i32
    %2 = arith.cmpi ne, %1, %c0_i32_0 : i32
    scf.if %2 {
      %c0_54 = arith.constant 0 : index
      %c0_55 = arith.constant 0 : index
      %70 = vector.load %arg2[%c0_54, %c0_55] : memref<16x128xf32, #tpu.memory_space<vmem>>, vector<16x128xf32>
      %c0_56 = arith.constant 0 : index
      %c0_57 = arith.constant 0 : index
      %71 = vector.load %arg13[%c0_56, %c0_57] : memref<16x128xf32, #tpu.memory_space<vmem>>, vector<16x128xf32>
      tpu.vector_store %arg13[%c0_56, %c0_57], %70 {strides = array<i32>} : memref<16x128xf32, #tpu.memory_space<vmem>>, vector<16x128xf32>,
    } else {
    }
    %c0 = arith.constant 0 : index
    %c0_1 = arith.constant 0 : index
    %3 = vector.load %arg13[%c0, %c0_1] : memref<16x128xf32, #tpu.memory_space<vmem>>, vector<16x128xf32>
    %c0_2 = arith.constant 0 : index
    %c0_3 = arith.constant 0 : index
    %4 = vector.load %arg2[%c0_2, %c0_3] : memref<16x128xf32, #tpu.memory_space<vmem>>, vector<16x128xf32>
    %c0_4 = arith.constant 0 : index
    %c0_5 = arith.constant 0 : index
    %5 = vector.load %arg5[%c0_4, %c0_5] : memref<16x8xf32, #tpu.memory_space<vmem>>, vector<16x1xf32>
    %c0_6 = arith.constant 0 : index
    %c1 = arith.constant 1 : index
    %6 = vector.load %arg5[%c0_6, %c1] : memref<16x8xf32, #tpu.memory_space<vmem>>, vector<16x1xf32>
    %c0_7 = arith.constant 0 : index
    %c2 = arith.constant 2 : index
    %7 = vector.load %arg5[%c0_7, %c2] : memref<16x8xf32, #tpu.memory_space<vmem>>, vector<16x1xf32>
    %c0_8 = arith.constant 0 : index
    %c0_9 = arith.constant 0 : index
    %8 = vector.load %arg3[%c0_8, %c0_9] : memref<56x16xbf16, #tpu.memory_space<vmem>>, vector<56x16xbf16>
    %9 = arith.truncf %3 : vector<16x128xf32> to vector<16x128xbf16>
    %cst = arith.constant dense<0.000000e+00> : vector<56x128xf32>
    %10 = tpu.matmul %8, %9, %cst {dimension_numbers = #tpu.dot_dimension_numbers<[1], [0], [0], [1], [0, 0, 1, 1], [], []>} : vector<56x16xbf16>, vector<16x128xbf16>, vector<56x128xf32> -> vector<56x128xf32>
    %c0_10 = arith.constant 0 : index
    %c0_11 = arith.constant 0 : index
    %c0_12 = arith.constant 0 : index
    %11 = vector.load %arg6[%c0_10, %c0_11, %c0_12] : memref<1x56x128xf32, #tpu.memory_space<vmem>>, vector<1x56x128xf32>
    %12 = vector.shape_cast %11 : vector<1x56x128xf32> to vector<56x128xf32>
    %13 = arith.mulf %12, %10 : vector<56x128xf32>
    %c0_13 = arith.constant 0 : index
    %c0_14 = arith.constant 0 : index
    %14 = vector.load %arg14[%c0_13, %c0_14] : memref<56x128xf32, #tpu.memory_space<vmem>>, vector<56x128xf32>
    tpu.vector_store %arg14[%c0_13, %c0_14], %13 {strides = array<i32>} : memref<56x128xf32, #tpu.memory_space<vmem>>, vector<56x128xf32>,
    %c0_15 = arith.constant 0 : index
    %c0_16 = arith.constant 0 : index
    %15 = vector.load %arg4[%c0_15, %c0_16] : memref<16x56xbf16, #tpu.memory_space<vmem>>, vector<16x56xbf16>
    %16 = arith.truncf %13 : vector<56x128xf32> to vector<56x128xbf16>
    %cst_17 = arith.constant dense<0.000000e+00> : vector<16x128xf32>
    %17 = tpu.matmul %15, %16, %cst_17 {dimension_numbers = #tpu.dot_dimension_numbers<[1], [0], [0], [1], [0, 0, 1, 1], [], []>} : vector<16x56xbf16>, vector<56x128xbf16>, vector<16x128xf32> -> vector<16x128xf32>
    %18 = arith.addf %17, %4 : vector<16x128xf32>
    %19 = arith.mulf %13, %13 : vector<56x128xf32>
    %20 = arith.truncf %19 : vector<56x128xf32> to vector<56x128xbf16>
    %cst_18 = arith.constant dense<0.000000e+00> : vector<16x128xf32>
    %21 = tpu.matmul %15, %20, %cst_18 {dimension_numbers = #tpu.dot_dimension_numbers<[1], [0], [0], [1], [0, 0, 1, 1], [], []>} : vector<16x56xbf16>, vector<56x128xbf16>, vector<16x128xf32> -> vector<16x128xf32>
    %22 = arith.mulf %4, %4 : vector<16x128xf32>
    %23 = arith.addf %21, %22 : vector<16x128xf32>
    %24 = vector.broadcast %5 : vector<16x1xf32> to vector<16x128xf32>
    %25 = arith.mulf %18, %24 : vector<16x128xf32>
    %26 = vector.broadcast %5 : vector<16x1xf32> to vector<16x128xf32>
    %27 = arith.mulf %23, %26 : vector<16x128xf32>
    %28 = arith.mulf %25, %25 : vector<16x128xf32>
    %29 = arith.subf %27, %28 : vector<16x128xf32>
    %cst_19 = arith.constant 9.99999997E-7 : f32
    %30 = vector.broadcast %cst_19 : f32 to vector<16x128xf32>
    %31 = arith.maximumf %29, %30 : vector<16x128xf32>
    %32 = math.sqrt %31 : vector<16x128xf32>
    %c0_20 = arith.constant 0 : index
    %c0_21 = arith.constant 0 : index
    %33 = vector.load %arg15[%c0_20, %c0_21] : memref<16x128xf32, #tpu.memory_space<vmem>>, vector<16x128xf32>
    tpu.vector_store %arg15[%c0_20, %c0_21], %4 {strides = array<i32>} : memref<16x128xf32, #tpu.memory_space<vmem>>, vector<16x128xf32>,
    %c0_22 = arith.constant 0 : index
    %c0_23 = arith.constant 0 : index
    %34 = vector.load %arg16[%c0_22, %c0_23] : memref<16x128xf32, #tpu.memory_space<vmem>>, vector<16x128xf32>
    tpu.vector_store %arg16[%c0_22, %c0_23], %4 {strides = array<i32>} : memref<16x128xf32, #tpu.memory_space<vmem>>, vector<16x128xf32>,
    %c0_i32_24 = arith.constant 0 : i32
    %c56_i32 = arith.constant 56 : i32
    %35 = arith.addi %c0_i32_24, %c56_i32 : i32
    %c1_i32 = arith.constant 1 : i32
    scf.for %arg17 = %c0_i32_24 to %35 step %c1_i32  : i32 {
      %70 = arith.index_cast %arg17 : i32 to index
      %71 = memref.load %arg1[%70] : memref<56xi32, #tpu.memory_space<smem>>
      %72 = arith.index_cast %arg17 : i32 to index
      %c0_54 = arith.constant 0 : index
      %73 = vector.load %arg14[%72, %c0_54] : memref<56x128xf32, #tpu.memory_space<vmem>>, vector<1x128xf32>
      %74 = arith.index_cast %71 : i32 to index
      %c0_55 = arith.constant 0 : index
      %75 = vector.load %arg15[%74, %c0_55] : memref<16x128xf32, #tpu.memory_space<vmem>>, vector<1x128xf32>
      %76 = arith.maximumf %75, %73 : vector<1x128xf32>
      %77 = arith.index_cast %71 : i32 to index
      %c0_56 = arith.constant 0 : index
      %78 = vector.load %arg15[%77, %c0_56] : memref<16x128xf32, #tpu.memory_space<vmem>>, vector<1x128xf32>
      tpu.vector_store %arg15[%77, %c0_56], %76 {strides = array<i32>} : memref<16x128xf32, #tpu.memory_space<vmem>>, vector<1x128xf32>,
      %79 = arith.index_cast %71 : i32 to index
      %c0_57 = arith.constant 0 : index
      %80 = vector.load %arg16[%79, %c0_57] : memref<16x128xf32, #tpu.memory_space<vmem>>, vector<1x128xf32>
      %81 = arith.minimumf %80, %73 : vector<1x128xf32>
      %82 = arith.index_cast %71 : i32 to index
      %c0_58 = arith.constant 0 : index
      %83 = vector.load %arg16[%82, %c0_58] : memref<16x128xf32, #tpu.memory_space<vmem>>, vector<1x128xf32>
      tpu.vector_store %arg16[%82, %c0_58], %81 {strides = array<i32>} : memref<16x128xf32, #tpu.memory_space<vmem>>, vector<1x128xf32>,
    }
    %c56_i32_25 = arith.constant 56 : i32
    %c0_26 = arith.constant 0 : index
    %c0_27 = arith.constant 0 : index
    %36 = vector.load %arg15[%c0_26, %c0_27] : memref<16x128xf32, #tpu.memory_space<vmem>>, vector<16x128xf32>
    %c0_28 = arith.constant 0 : index
    %c0_29 = arith.constant 0 : index
    %37 = vector.load %arg16[%c0_28, %c0_29] : memref<16x128xf32, #tpu.memory_space<vmem>>, vector<16x128xf32>
    %38 = tpu.concatenate %25, %36, %37, %32 in 1 : vector<16x128xf32>, vector<16x128xf32>, vector<16x128xf32>, vector<16x128xf32> -> vector<16x512xf32>
    %39 = arith.truncf %38 : vector<16x512xf32> to vector<16x512xbf16>
    %40 = arith.truncf %3 : vector<16x128xf32> to vector<16x128xbf16>
    %c0_30 = arith.constant 0 : index
    %c0_31 = arith.constant 0 : index
    %c0_32 = arith.constant 0 : index
    %41 = vector.load %arg7[%c0_30, %c0_31, %c0_32] : memref<1x128x128xbf16, #tpu.memory_space<vmem>>, vector<1x128x128xbf16>
    %42 = vector.shape_cast %41 : vector<1x128x128xbf16> to vector<128x128xbf16>
    %cst_33 = arith.constant dense<0.000000e+00> : vector<16x128xf32>
    %43 = tpu.matmul %40, %42, %cst_33 {dimension_numbers = #tpu.dot_dimension_numbers<[1], [0], [0], [1], [0, 0, 1, 1], [], []>} : vector<16x128xbf16>, vector<128x128xbf16>, vector<16x128xf32> -> vector<16x128xf32>
    %c0_34 = arith.constant 0 : index
    %c0_35 = arith.constant 0 : index
    %c0_36 = arith.constant 0 : index
    %44 = vector.load %arg8[%c0_34, %c0_35, %c0_36] : memref<1x512x128xbf16, #tpu.memory_space<vmem>>, vector<1x512x128xbf16>
    %45 = vector.shape_cast %44 : vector<1x512x128xbf16> to vector<512x128xbf16>
    %cst_37 = arith.constant dense<0.000000e+00> : vector<16x128xf32>
    %46 = tpu.matmul %39, %45, %cst_37 {dimension_numbers = #tpu.dot_dimension_numbers<[1], [0], [0], [1], [0, 0, 1, 1], [], []>} : vector<16x512xbf16>, vector<512x128xbf16>, vector<16x128xf32> -> vector<16x128xf32>
    %47 = arith.addf %43, %46 : vector<16x128xf32>
    %c0_38 = arith.constant 0 : index
    %c0_39 = arith.constant 0 : index
    %c0_40 = arith.constant 0 : index
    %48 = vector.load %arg9[%c0_38, %c0_39, %c0_40] : memref<1x512x128xbf16, #tpu.memory_space<vmem>>, vector<1x512x128xbf16>
    %49 = vector.shape_cast %48 : vector<1x512x128xbf16> to vector<512x128xbf16>
    %cst_41 = arith.constant dense<0.000000e+00> : vector<16x128xf32>
    %50 = tpu.matmul %39, %49, %cst_41 {dimension_numbers = #tpu.dot_dimension_numbers<[1], [0], [0], [1], [0, 0, 1, 1], [], []>} : vector<16x512xbf16>, vector<512x128xbf16>, vector<16x128xf32> -> vector<16x128xf32>
    %51 = vector.broadcast %6 : vector<16x1xf32> to vector<16x128xf32>
    %52 = arith.mulf %51, %50 : vector<16x128xf32>
    %53 = arith.addf %47, %52 : vector<16x128xf32>
    %c0_42 = arith.constant 0 : index
    %c0_43 = arith.constant 0 : index
    %c0_44 = arith.constant 0 : index
    %54 = vector.load %arg10[%c0_42, %c0_43, %c0_44] : memref<1x512x128xbf16, #tpu.memory_space<vmem>>, vector<1x512x128xbf16>
    %55 = vector.shape_cast %54 : vector<1x512x128xbf16> to vector<512x128xbf16>
    %cst_45 = arith.constant dense<0.000000e+00> : vector<16x128xf32>
    %56 = tpu.matmul %39, %55, %cst_45 {dimension_numbers = #tpu.dot_dimension_numbers<[1], [0], [0], [1], [0, 0, 1, 1], [], []>} : vector<16x512xbf16>, vector<512x128xbf16>, vector<16x128xf32> -> vector<16x128xf32>
    %57 = vector.broadcast %7 : vector<16x1xf32> to vector<16x128xf32>
    %58 = arith.mulf %57, %56 : vector<16x128xf32>
    %59 = arith.addf %53, %58 : vector<16x128xf32>
    %c0_46 = arith.constant 0 : index
    %c0_47 = arith.constant 0 : index
    %c0_48 = arith.constant 0 : index
    %60 = vector.load %arg11[%c0_46, %c0_47, %c0_48] : memref<1x1x128xf32, #tpu.memory_space<vmem>>, vector<1x1x128xf32>
    %61 = vector.shape_cast %60 : vector<1x1x128xf32> to vector<1x128xf32>
    %62 = vector.broadcast %61 : vector<1x128xf32> to vector<16x128xf32>
    %63 = arith.addf %59, %62 : vector<16x128xf32>
    %cst_49 = arith.constant 0.000000e+00 : f32
    %64 = vector.broadcast %cst_49 : f32 to vector<16x128xf32>
    %65 = arith.maximumf %63, %64 : vector<16x128xf32>
    %c0_50 = arith.constant 0 : index
    %c0_51 = arith.constant 0 : index
    %66 = vector.load %arg13[%c0_50, %c0_51] : memref<16x128xf32, #tpu.memory_space<vmem>>, vector<16x128xf32>
    tpu.vector_store %arg13[%c0_50, %c0_51], %65 {strides = array<i32>} : memref<16x128xf32, #tpu.memory_space<vmem>>, vector<16x128xf32>,
    %c1_i32_52 = arith.constant 1 : i32
    %67 = arith.cmpi eq, %arg0, %c1_i32_52 : i32
    %68 = arith.extui %67 : i1 to i32
    %c0_i32_53 = arith.constant 0 : i32
    %69 = arith.cmpi ne, %68, %c0_i32_53 : i32
    scf.if %69 {
      %c0_54 = arith.constant 0 : index
      %c0_55 = arith.constant 0 : index
      %70 = vector.load %arg12[%c0_54, %c0_55] : memref<16x128xf32, #tpu.memory_space<vmem>>, vector<16x128xf32>
      tpu.vector_store %arg12[%c0_54, %c0_55], %65 {strides = array<i32>} : memref<16x128xf32, #tpu.memory_space<vmem>>, vector<16x128xf32>,
    } else {
    }
    return
  }
  func.func @transform_0(%arg0: i32, %arg1: memref<56xi32, #tpu.memory_space<smem>>) -> (i32, i32) {
    %c0_i32 = arith.constant 0 : i32
    %c0_i32_0 = arith.constant 0 : i32
    %c0_i32_1 = arith.constant 0 : i32
    return %c0_i32, %c0_i32_0 : i32, i32
  }
  func.func @transform_1(%arg0: i32, %arg1: memref<56xi32, #tpu.memory_space<smem>>) -> (i32, i32) {
    %c0_i32 = arith.constant 0 : i32
    %c0_i32_0 = arith.constant 0 : i32
    %c0_i32_1 = arith.constant 0 : i32
    return %c0_i32, %c0_i32_0 : i32, i32
  }
  func.func @transform_2(%arg0: i32, %arg1: memref<56xi32, #tpu.memory_space<smem>>) -> (i32, i32) {
    %c0_i32 = arith.constant 0 : i32
    %c0_i32_0 = arith.constant 0 : i32
    %c0_i32_1 = arith.constant 0 : i32
    return %c0_i32, %c0_i32_0 : i32, i32
  }
  func.func @transform_3(%arg0: i32, %arg1: memref<56xi32, #tpu.memory_space<smem>>) -> (i32, i32) {
    %c0_i32 = arith.constant 0 : i32
    %c0_i32_0 = arith.constant 0 : i32
    %c0_i32_1 = arith.constant 0 : i32
    return %c0_i32, %c0_i32_0 : i32, i32
  }
  func.func @transform_4(%arg0: i32, %arg1: memref<56xi32, #tpu.memory_space<smem>>) -> (i32, i32, i32) {
    %c0_i32 = arith.constant 0 : i32
    %c0_i32_0 = arith.constant 0 : i32
    %c0_i32_1 = arith.constant 0 : i32
    return %arg0, %c0_i32, %c0_i32_0 : i32, i32, i32
  }
  func.func @transform_5(%arg0: i32, %arg1: memref<56xi32, #tpu.memory_space<smem>>) -> (i32, i32, i32) {
    %c0_i32 = arith.constant 0 : i32
    %c0_i32_0 = arith.constant 0 : i32
    %c0_i32_1 = arith.constant 0 : i32
    return %arg0, %c0_i32, %c0_i32_0 : i32, i32, i32
  }
  func.func @transform_6(%arg0: i32, %arg1: memref<56xi32, #tpu.memory_space<smem>>) -> (i32, i32, i32) {
    %c0_i32 = arith.constant 0 : i32
    %c0_i32_0 = arith.constant 0 : i32
    %c0_i32_1 = arith.constant 0 : i32
    return %arg0, %c0_i32, %c0_i32_0 : i32, i32, i32
  }
  func.func @transform_7(%arg0: i32, %arg1: memref<56xi32, #tpu.memory_space<smem>>) -> (i32, i32, i32) {
    %c0_i32 = arith.constant 0 : i32
    %c0_i32_0 = arith.constant 0 : i32
    %c0_i32_1 = arith.constant 0 : i32
    return %arg0, %c0_i32, %c0_i32_0 : i32, i32, i32
  }
  func.func @transform_8(%arg0: i32, %arg1: memref<56xi32, #tpu.memory_space<smem>>) -> (i32, i32, i32) {
    %c0_i32 = arith.constant 0 : i32
    %c0_i32_0 = arith.constant 0 : i32
    %c0_i32_1 = arith.constant 0 : i32
    return %arg0, %c0_i32, %c0_i32_0 : i32, i32, i32
  }
  func.func @transform_9(%arg0: i32, %arg1: memref<56xi32, #tpu.memory_space<smem>>) -> (i32, i32, i32) {
    %c0_i32 = arith.constant 0 : i32
    %c0_i32_0 = arith.constant 0 : i32
    %c0_i32_1 = arith.constant 0 : i32
    return %arg0, %c0_i32, %c0_i32_0 : i32, i32, i32
  }
  func.func @transform_10(%arg0: i32, %arg1: memref<56xi32, #tpu.memory_space<smem>>) -> (i32, i32) {
    %c0_i32 = arith.constant 0 : i32
    %c0_i32_0 = arith.constant 0 : i32
    %c0_i32_1 = arith.constant 0 : i32
    return %c0_i32, %c0_i32_0 : i32, i32
  }
}

</mosaic_0001>

<bundles_post_ra>
// kernel: tpu_custom_call.1
= control target key start
LH: loop header
LB: loop body
LE: loop exit
PB: predicated region body
PF: predicated region fallthrough
CT: control target
= control target key end

     0   :  { %s2931_s20 = smov [#allocation7]   ;;  %s3423_s0 = inlined_call_operand.vmem [shape: s32[56], index: 0, kind: input, shape index: {}]   ;;  %s3424_s1 = inlined_call_operand.vmem [shape: f32[16,128], index: 1, kind: input, shape index: {}]   ;;  %s3425_s2 = inlined_call_operand.vmem [shape: bf16[56,16], index: 2, kind: input, shape index: {}]   ;;  %s3426_s3 = inlined_call_operand.vmem [shape: bf16[16,56], index: 3, kind: input, shape index: {}]   ;;  %s3427_s4 = inlined_call_operand.vmem [shape: f32[16,8], index: 4, kind: input, shape index: {}]   ;;  %s3428_s5 = inlined_call_operand.hbm [shape: f32[2,56,128], index: 5, kind: input, shape index: {}]   ;;  %s3429_s6 = inlined_call_operand.hbm [shape: bf16[2,128,128], index: 6, kind: input, shape index: {}]   ;;  %s3430_s7 = inlined_call_operand.hbm [shape: bf16[2,512,128], index: 7, kind: input, shape index: {}]   ;;  %s3431_s8 = inlined_call_operand.hbm [shape: bf16[2,512,128], index: 8, kind: input, shape index: {}]   ;;  %s3432_s9 = inlined_call_operand.hbm [shape: bf16[2,512,128], index: 9, kind: input, shape index: {}]   ;;  %s3433_s10 = inlined_call_operand.vmem [shape: f32[2,1,128], index: 10, kind: input, shape index: {}]   ;;  %s3434_s11 = inlined_call_operand.hbm [shape: f32[16,128], index: 11, kind: output, shape index: {}]  }
   0x1   :  { %3447 = sst [smem:[#allocation26_spill]] %s3424_s1  ;;  %s17_s19 = sshll.u32 %s3423_s0, 4  ;;  %s18_s19 = int_to_ptr.vmem [resolvable:$true] %s17_s19 }
   0x2   :  { %3448 = sst [smem:[#allocation27_spill]] %s3425_s2 }
   0x3   :  { %3449 = sst [smem:[#allocation28_spill]] %s3426_s3 }
   0x4   :  { %3450 = sst [smem:[#allocation29_spill]] %s3427_s4 }
   0x5   :  { %3451 = sst [smem:[#allocation30_spill]] %s3429_s6 }
   0x6   :  { %3452 = sst [smem:[#allocation31_spill]] %s3431_s8 }
   0x7   :  { %3453 = sst [smem:[#allocation32_spill]] %s3433_s10 }
   0x8   :  { %3454 = sst [smem:[#allocation33_spill]] %s3434_s11 }
   0x9   :  { %20 = dma.vmem_to_smem %s18_s19, 16, %s2931_s20, [#allocation6] }
   0xa   :  { %2893 = dma.done.wait [#allocation6], 16 }
   0xb   :  { %2894 = vsyncadd [#allocation6], 4294967280 }
   0xc   :  { %23 = sfence }
   0xd   :  { %24 = vsyncpa [#allocation9], 0 }
   0xe   :  { %26 = vsyncpa [#allocation9 + $0x1], 0 }
   0xf   :  { %27 = vsyncpa [#allocation12], 0 }
  0x10   :  { %29 = vsyncpa [#allocation12 + $0x1], 0 }
  0x11   :  { %30 = vsyncpa [#allocation15], 0 }
  0x12   :  { %32 = vsyncpa [#allocation15 + $0x1], 0 }
  0x13   :  { %33 = vsyncpa [#allocation10], 0  ;;  %s3005_s21 = smov 0   ;;  %s3007_s22 = smov 0  }
  0x14   :  { %s3009_s23 = smov 0   ;;  %s3011_s0 = smov 0  }
  0x15 LB: > { %3455 = sst [smem:[#allocation23_spill]] %s2921_s23  ;;  %s3024_s24 = sadd.s32 4294967295, %s2925_s0   ;;  %s2925_s0 = sphi %s3011_s0, %s3475_s0   ;;  %s2921_s23 = sphi %s3009_s23, %s3477_s23   ;;  %s2917_s22 = sphi %s3007_s22, %s3479_s22   ;;  %s2913_s21 = sphi %s3005_s21, %s3478_s21  }
  0x16   : > { %s3027_s25 = sadd.s32 1, %s2925_s0   ;;  %s130_s27 = sadd.s32 1, %s2921_s23 }
  0x17   : > { %3456 = sst [smem:[#allocation24_spill]] %s3027_s25  ;;  %s127_s26 = ssub.s32 %s2925_s0, %s3027_s25 }
  0x18   : > { %p128_p0 = scmp.eq.s32.totalorder %s127_s26, 0  ;;  %p137_p1 = scmp.ne.s32.totalorder %s2921_s23, %s2917_s22 }
  0x19   : > { %p138_p2 = scmp.eq.s32.totalorder %s2925_s0, 0  ;;  %p143_p3 = scmp.ne.s32.totalorder %s2917_s22, %s2913_s21 }
  0x1a   : > { %s3037_s28 = scalar_select %p128_p0, %s2921_s23, %s130_s27  }
  0x1b   : > { %p139_p4 = por %p138_p2, %p137_p1  ;;  %p144_p5 = scmp.eq.s32.totalorder %s3024_s24, 0 }
  0x1c   : > { %3457 = sst [smem:[#allocation25_spill]] %s3037_s28  ;;  %p2620_p6 = scmp.lt.s32.totalorder %s2925_s0, 2 }
  0x1d   : > { %p3041_p7 = por %p144_p5, %p143_p3  ;;  %s3046_s30 = sand.u32 1, %s2921_s23  }
  0x1e   : > { %p3048_p8 = pnand %p2620_p6, %p139_p4  ;;  %s3436_s13 = sand.u32 1, %s2925_s0  }
  0x1f   : > { %s2014_s14 = sshll.u32 %s3046_s30, 6  ;;  %s2475_s15 = sshll.u32 %s2925_s0, 6 }
  0x20   : > { %s356_s16 = scalar_lea.vmem [#allocation11], %s2014_s14  ;;  %s3460_s6 = sld [smem:[#allocation30_spill]] }
  0x21   : > { %s364_s17 = sshll.u32 %s356_s16, 4  ;;  %s3060_s26 = scalar_lea.sflag [#allocation12], %s3436_s13  ;;  %s365_s17 = int_to_ptr.vmem [resolvable:$true] %s364_s17 }
  0x22   : > { %p3064_p10 = pneg %p3048_p8 }
  0x26   : > { %s361_s20 = scalar_lea.hbm %s3460_s6, %s2475_s15  ;;  %s2702_s16 = scalar_lea.hbm %s3460_s6, 128 }
  0x27   : > { %s362_s21 = sshll.u32 %s361_s20, 4  ;;  %s363_s21 = int_to_ptr.hbm [resolvable:$true] %s362_s21 }
  0x28   : > { %s2695_s27 = sshra.s32 %s363_s21, 4  ;;  %s2696_s27 = int_to_ptr.hbm [resolvable:$true] %s2695_s27 }
  0x29   : > { %s2697_s28 = scalar_lea.hbm %s2696_s27, 64  ;;  %p2703_p13 = scmp.lt.s32.totalorder %s2696_s27, %s3460_s6 }
  0x2a   : > { %p2698_p9 = scmp.ne.s32.totalorder %s2696_s27, %s2697_s28  ;;  %p2704_p0 = scmp.lt.s32.totalorder %s2702_s16, %s2697_s28 }
  0x2c   : > { %p2700_p11 = pnand %p3064_p10, %p2698_p9  ;;  %p2705_p1 = por %p2704_p0, %p2703_p13 }
  0x2e   : > { %p2701_p12 = pneg %p2700_p11 }
  0x30   : > { %p2706_p2 = pnand %p2705_p1, %p2701_p12 }
  0x32   : > { %2709 = shalt.err (!%p2706_p2)
}
  0x33   : > { %s3437_s20 = smov 64   ;;  %s3439_s13 = smov 4  }
  0x34   : > { %2610 = dma.hbm_to_vmem [thread:$0]  (!%p3048_p8), %s363_s21, 1024, %s365_s17, %s3060_s26, %s3437_s20, %s3437_s20, %s3439_s13  }
  0x35   : > { %p2026_p3 = scmp.ge.s32.totalorder %s2925_s0, 1  ;;  %p444_p4 = scmp.lt.s32.totalorder %s2925_s0, 3 }
  0x36   : > { %s3085_s28 = sshll.u32 %s3046_s30, 8  ;;  %s3088_s27 = sshll.u32 %s2925_s0, 8 }
  0x37   : > { %p3090_p5 = pnand %p2026_p3, %p444_p4  ;;  %s3463_s8 = sld [smem:[#allocation31_spill]] }
  0x38   : > { %s400_s6 = scalar_lea.vmem [#allocation14], %s3085_s28  ;;  %s3464_s21 = sand.u32 1, %s2925_s0  }
  0x39   : > { %s408_s17 = sshll.u32 %s400_s6, 4  ;;  %s3101_s20 = scalar_lea.sflag [#allocation15], %s3464_s21  ;;  %s409_s17 = int_to_ptr.vmem [resolvable:$true] %s408_s17 }
  0x3d   : > { %s405_s18 = scalar_lea.hbm %s3463_s8, %s3088_s27  ;;  %s2732_s15 = scalar_lea.hbm %s3463_s8, 512 }
  0x3e   : > { %s406_s19 = sshll.u32 %s405_s18, 4  ;;  %s407_s19 = int_to_ptr.hbm [resolvable:$true] %s406_s19 }
  0x3f   : > { %s2725_s13 = sshra.s32 %s407_s19, 4  ;;  %s2726_s13 = int_to_ptr.hbm [resolvable:$true] %s2725_s13 }
  0x40   : > { %s2727_s25 = scalar_lea.hbm %s2726_s13, 256  ;;  %p2733_p12 = scmp.lt.s32.totalorder %s2726_s13, %s3463_s8 }
  0x41   : > { %p2728_p6 = scmp.ne.s32.totalorder %s2726_s13, %s2727_s25  ;;  %p2734_p13 = scmp.lt.s32.totalorder %s2732_s15, %s2727_s25 }
  0x43   : > { %p2730_p9 = pnand %p2728_p6, %p3064_p10  ;;  %p2735_p0 = por %p2734_p13, %p2733_p12 }
  0x45   : > { %p2731_p11 = pneg %p2730_p9 }
  0x47   : > { %p2736_p1 = pnand %p2735_p0, %p2731_p11 }
  0x49   : > { %2739 = shalt.err (!%p2736_p1)
}
  0x4a   : > { %s3465_s6 = smov 4   ;;  %s3466_s21 = smov 64  }
  0x4b   : > { %2616 = dma.hbm_to_vmem [thread:$0]  (!%p3048_p8), %s407_s19, 4096, %s409_s17, %s3101_s20, %s3466_s21, %s3466_s21, %s3465_s6  }
  0x4c   : > { %s2587_s3 = smul.u32 56, %s3046_s30  ;;  %s331_s8 = scalar_lea.sflag [#allocation9], %s3046_s30 }
  0x4d   : > { %s2588_s11 = smul.u32 56, %s2925_s0  ;;  %s2762_s0 = scalar_lea.hbm %s3428_s5, 112 }
  0x4e   : > { %s334_s13 = scalar_lea.vmem [#allocation8], %s2587_s3 }
  0x4f   : > { %s339_s25 = scalar_lea.hbm %s3428_s5, %s2588_s11  ;;  %s342_s15 = sshll.u32 %s334_s13, 4  ;;  %s343_s15 = int_to_ptr.vmem [resolvable:$true] %s342_s15 }
  0x50   : > { %s340_s18 = sshll.u32 %s339_s25, 4  ;;  %s341_s18 = int_to_ptr.hbm [resolvable:$true] %s340_s18 }
  0x51   : > { %s2755_s2 = sshra.s32 %s341_s18, 4  ;;  %s2756_s2 = int_to_ptr.hbm [resolvable:$true] %s2755_s2 }
  0x52   : > { %s2757_s1 = scalar_lea.hbm %s2756_s2, 56  ;;  %p2763_p6 = scmp.lt.s32.totalorder %s2756_s2, %s3428_s5 }
  0x53   : > { %p2758_p2 = scmp.ne.s32.totalorder %s2756_s2, %s2757_s1  ;;  %p2764_p9 = scmp.lt.s32.totalorder %s2762_s0, %s2757_s1 }
  0x55   : > { %p2760_p3 = pnand %p2758_p2, %p3064_p10  ;;  %p2765_p11 = por %p2764_p9, %p2763_p6 }
  0x57   : > { %p2761_p4 = pneg %p2760_p3 }
  0x59   : > { %p2766_p12 = pnand %p2765_p11, %p2761_p4 }
  0x5b   : > { %2769 = shalt.err (!%p2766_p12)
}
  0x5c   : > { %s2934_s30 = smov 128   ;;  %s2935_s3 = smov 8  }
  0x5d   : > { %2607 = dma.hbm_to_vmem [thread:$0]  (!%p3048_p8), %s341_s18, 896, %s343_s15, %s331_s8, %s2934_s30, %s2934_s30, %s2935_s3  }
  0x5e   : > { %s383_s25 = scalar_lea.hbm %s3430_s7, %s3088_s27  ;;  %s378_s13 = scalar_lea.vmem [#allocation13], %s3085_s28 }
  0x5f   : > { %s386_s19 = sshll.u32 %s378_s13, 4  ;;  %s384_s10 = sshll.u32 %s383_s25, 4  ;;  %s387_s19 = int_to_ptr.vmem [resolvable:$true] %s386_s19  ;;  %s385_s10 = int_to_ptr.hbm [resolvable:$true] %s384_s10 }
  0x60   : > { %s2785_s1 = sshra.s32 %s385_s10, 4  ;;  %s2792_s8 = scalar_lea.hbm %s3430_s7, 512  ;;  %s2786_s1 = int_to_ptr.hbm [resolvable:$true] %s2785_s1 }
  0x61   : > { %s2787_s2 = scalar_lea.hbm %s2786_s1, 256  ;;  %p2793_p2 = scmp.lt.s32.totalorder %s2786_s1, %s3430_s7 }
  0x62   : > { %p2788_p13 = scmp.ne.s32.totalorder %s2786_s1, %s2787_s2  ;;  %p2794_p3 = scmp.lt.s32.totalorder %s2792_s8, %s2787_s2 }
  0x64   : > { %p2790_p0 = pnand %p2788_p13, %p3064_p10  ;;  %p2795_p4 = por %p2794_p3, %p2793_p2 }
  0x66   : > { %p2791_p1 = pneg %p2790_p0 }
  0x68   : > { %p2796_p6 = pnand %p2795_p4, %p2791_p1 }
  0x6a   : > { %2799 = shalt.err (!%p2796_p6)
}
  0x6b   : > { %2613 = dma.hbm_to_vmem [thread:$0]  (!%p3048_p8), %s385_s10, 4096, %s387_s19, %s3060_s26, %s3466_s21, %s3466_s21, %s3465_s6  }
  0x6c   : > { %s427_s3 = scalar_lea.hbm %s3432_s9, %s3088_s27  ;;  %s422_s11 = scalar_lea.vmem [#allocation16], %s3085_s28 }
  0x6d   : > { %s430_s16 = sshll.u32 %s422_s11, 4  ;;  %s428_s25 = sshll.u32 %s427_s3, 4  ;;  %s431_s16 = int_to_ptr.vmem [resolvable:$true] %s430_s16  ;;  %s429_s25 = int_to_ptr.hbm [resolvable:$true] %s428_s25 }
  0x6e   : > { %s2815_s13 = sshra.s32 %s429_s25, 4  ;;  %s2822_s26 = scalar_lea.hbm %s3432_s9, 512  ;;  %s2816_s13 = int_to_ptr.hbm [resolvable:$true] %s2815_s13 }
  0x6f   : > { %s2817_s1 = scalar_lea.hbm %s2816_s13, 256  ;;  %p2823_p13 = scmp.lt.s32.totalorder %s2816_s13, %s3432_s9 }
  0x70   : > { %p2818_p9 = scmp.ne.s32.totalorder %s2816_s13, %s2817_s1  ;;  %p2824_p0 = scmp.lt.s32.totalorder %s2822_s26, %s2817_s1 }
  0x72   : > { %p2820_p11 = pnand %p2818_p9, %p3064_p10  ;;  %p2825_p1 = por %p2824_p0, %p2823_p13 }
  0x74   : > { %p2821_p12 = pneg %p2820_p11 }
  0x76   : > { %p2826_p2 = pnand %p2825_p1, %p2821_p12 }
  0x78   : > { %2829 = shalt.err (!%p2826_p2)
}
  0x79   : > { %2619 = dma.hbm_to_vmem [thread:$0]  (!%p3048_p8), %s429_s25, 4096, %s431_s16, %s3101_s20, %s3466_s21, %s3466_s21, %s3465_s6  }
  0x7a   : > { %448 = sbr.rel (%p3090_p5) target bundleno = 820 (0x334), region = 60  ;;  %s450_s23 = sand.u32 (!%p3090_p5), 1, %s2917_s22  }
  0x7b   : > { %s2589_s28 = smul.u32 (!%p3090_p5), 56, %s450_s23  ;;  %s451_s27 = scalar_lea.sflag (!%p3090_p5), [#allocation9], %s450_s23 }
  0x7d   : > { %s3174_s0 = scalar_lea.vmem (!%p3090_p5), [#allocation8], %s2589_s28 }
  0x7f   : > { %2896 = dma.done.wait (%p3041_p7), %s451_s27, 896  }
  0x80   : > { %2898 = vsyncadd (%p3041_p7), %s451_s27, 4294966400  ;;  %s460_s12 = sand.u32 1, %s3024_s24   ;;  %s2027_s8 = sshll.u32 %s450_s23, 6 }
  0x81   : > { %s461_s20 = scalar_lea.sflag [#allocation12], %s460_s12  ;;  %s3181_s6 = scalar_lea.vmem [#allocation11], %s2027_s8 }
  0x82   : > { %2900 = dma.done.wait (%p3041_p7), %s461_s20, 5120  }
  0x83   : > { %2902 = vsyncadd (%p3041_p7), %s461_s20, 4294962176  ;;  %s2028_s14 = sshll.u32 %s450_s23, 8  ;;  %s481_s15 = scalar_lea.sflag [#allocation15], %s460_s12 }
  0x84   : > { %s3187_s21 = scalar_lea.vmem [#allocation13], %s2028_s14  ;;  %s3189_s18 = scalar_lea.vmem [#allocation14], %s2028_s14 }
  0x85   : > { %2904 = dma.done.wait (%p3041_p7), %s481_s15, 8192  }
  0x86   : > { %2906 = vsyncadd (%p3041_p7), %s481_s15, 4294959104  ;;  %p550_p8 = scmp.lt.s32.totalorder %s3024_s24, 1  ;;  %s3467_s11 = sld [smem:[#allocation32_spill]] }
  0x87   : > { %s3203_s25 = scalar_lea.vmem [#allocation16], %s2028_s14  ;;  %p2031_p10 = scmp.ne.s32.totalorder %s3024_s24, 0 }
  0x88   : > { %s3197_s4 = scalar_select %p550_p8, %s3024_s24, 1 }
  0x89   : > { %557 = sbr.rel (%p2031_p10) target bundleno = 146 (0x92), region = 84  ;;  %s3468_s2 = sld [smem:[#allocation26_spill]] (!%p2031_p10) }
  0x8c   : > { %s552_s16 = scalar_lea.vmem %s3467_s11, %s3197_s4 }
  0x8f   : > { %v558_v0 = vld [vmem:[%s3468_s2] sm:$0xff]  ;;  %v559_v1 = vld [vmem:[%s3468_s2 + $0x8] sm:$0xff] }
  0x90   : > { %560 = vst [vmem:[#allocation2] sm:$0xff] %v558_v0 }
  0x91   : > { %561 = vst [vmem:[#allocation2 + $0x8] sm:$0xff] %v559_v1 }
  0x92 PF: > { %s3469_s10 = sld [smem:[#allocation27_spill]]  ;;  %vm594_vm0 = vcmask 130048   ;;  %v635_v11 = vld [vmem:[%s3174_s0] sm:$0xff]  ;;  %v636_v14 = vld [vmem:[%s3174_s0 + $0x8] sm:$0xff]  ;;  %v637_v17 = vld [vmem:[%s3174_s0 + $0x10] sm:$0xff]  ;;  %v2936_v29 = vmov 0  }
  0x93   : > { %v638_v20 = vld [vmem:[%s3174_s0 + $0x18] sm:$0xff]  ;;  %v639_v23 = vld [vmem:[%s3174_s0 + $0x20] sm:$0xff]  ;;  %v640_v26 = vld [vmem:[%s3174_s0 + $0x28] sm:$0xff]  ;;  %s3470_s30 = sld [smem:[#allocation29_spill]]  ;;  %2674 = vset.pattern.permute.xlu0 %v2936_v29  ;;  %vm671_vm1 = vcmask 1043456   ;;  %vm667_vm2 = vcmask 457728  }
  0x94   : > { %v641_v31 = vld [vmem:[%s3174_s0 + $0x30] sm:$0xff]  ;;  %s3471_s1 = sld [smem:[#allocation28_spill]]  ;;  %s2927_s23 = smov 0  }
  0x95   : > { %s3472_s17 = sld [smem:[#allocation26_spill]] }
  0x97   : > { %v562_v2 = vld [vmem:[#allocation2] sm:$0xff] }
  0x98   : > { %v563_v3 = vld [vmem:[#allocation2 + $0x8] sm:$0xff]  ;;  %v2479_v5 = vld [vmem:[%s3469_s10] sm:$0xff]  ;;  %v2481_v7 = vld [vmem:[%s3469_s10 + $0x10] sm:$0xff] }
  0x99   : > { %v3212_v4 = vpack.c.bf16 %v563_v3, %v562_v2  ;;  %v2480_v6 = vld [vmem:[%s3469_s10 + $0x8] sm:$0xff]  ;;  %v574_v8 = vld [vmem:[%s3469_s10 + $0x18] sm:$0xf]  ;;  %v3236_v27 = vld [vmem:[%s3470_s30] sm:$0xff] }
  0x9a   : > { %v589_v9 = vunpack.c.l.b16 %v574_v8  ;;  %721 = vperm.xlu0 %2674, %v3236_v27   ;;  %v3243_v32 = vld [vmem:[%s3470_s30 + $0x8] sm:$0xff]  ;;  %v2482_v52 = vld [vmem:[%s3471_s1] sm:$0xff] }
  0x9b   : > { %614 = vmatpush.bf16.msra.mxu0 %v3212_v4  ;;  %v564_v54 = vld [vmem:[%s3472_s17] sm:$0xff]  ;;  %v565_v55 = vld [vmem:[%s3472_s17 + $0x8] sm:$0xff] }
  0x9c   : > { %v593_v10 = vpack.c.b16 %v589_v9, %v589_v9  ;;  %763 = vst [vmem:[#allocation4] sm:$0xff] %v564_v54  ;;  %v700_v60 = vmul.f32 %v564_v54, %v564_v54 }
  0x9d   : > { %765 = vst [vmem:[#allocation5] sm:$0xff] %v564_v54 }
  0x9e   : > { %2044 = vmatmul.msk.bf16.vlgmr.msra.gmra.mxu0 %vm594_vm0, %v2479_v5  ;;  %764 = vst [vmem:[#allocation4 + $0x8] sm:$0xff] %v565_v55  ;;  %v701_v5 = vmul.f32 %v565_v55, %v565_v55 }
  0x9f   : > { %766 = vst [vmem:[#allocation5 + $0x8] sm:$0xff] %v565_v55 }
  0xa2   : > { %726 = vperm.xlu0 %2674, %v3243_v32  }
  0xae   : > { %2045 = vmatmul.msk.bf16.gmra.mxu0 %vm594_vm0, %v2480_v6 }
  0xbe   : > { %2046 = vmatmul.msk.bf16.gmra.mxu0 %vm594_vm0, %v2481_v7 }
  0xce   : > { %2047 = vmatmul.msk.bf16.gmra.mxu0 %vm594_vm0, %v593_v10 }
 0x10c   : > { %v722_v58 = vpop.permute.xlu0 %721 }
 0x114   : > { %v727_v6 = vpop.permute.xlu0 %726 }
 0x11b   : > { %v616_v12 = vpop.f32.mrf.mxu0 }
 0x11c   : > { %v642_v13 = vmul.f32 %v635_v11, %v616_v12 }
 0x11e   : > { %649 = vst [vmem:[#allocation3] sm:$0xff] %v642_v13  ;;  %v689_v51 = vmul.f32 %v642_v13, %v642_v13 }
 0x123   : > { %v618_v15 = vpop.f32.mrf.mxu0 }
 0x124   : > { %v643_v16 = vmul.f32 %v636_v14, %v618_v15 }
 0x126   : > { %650 = vst [vmem:[#allocation3 + $0x8] sm:$0xff] %v643_v16  ;;  %v690_v49 = vmul.f32 %v643_v16, %v643_v16  ;;  %v658_v50 = vpack.c.bf16 %v643_v16, %v642_v13 }
 0x128   : > { %v696_v53 = vpack.c.bf16 %v690_v49, %v689_v51 }
 0x12b   : > { %v621_v18 = vpop.f32.mrf.mxu0 }
 0x12c   : > { %v644_v19 = vmul.f32 %v637_v17, %v621_v18 }
 0x12e   : > { %651 = vst [vmem:[#allocation3 + $0x10] sm:$0xff] %v644_v19  ;;  %v691_v47 = vmul.f32 %v644_v19, %v644_v19 }
 0x133   : > { %v623_v21 = vpop.f32.mrf.mxu0 }
 0x134   : > { %v645_v22 = vmul.f32 %v638_v20, %v623_v21 }
 0x136   : > { %652 = vst [vmem:[#allocation3 + $0x18] sm:$0xff] %v645_v22  ;;  %v692_v45 = vmul.f32 %v645_v22, %v645_v22  ;;  %v659_v46 = vpack.c.bf16 %v645_v22, %v644_v19 }
 0x138   : > { %v697_v48 = vpack.c.bf16 %v692_v45, %v691_v47 }
 0x13b   : > { %v626_v24 = vpop.f32.mrf.mxu0 }
 0x13c   : > { %v646_v25 = vmul.f32 %v639_v23, %v626_v24 }
 0x13e   : > { %653 = vst [vmem:[#allocation3 + $0x20] sm:$0xff] %v646_v25  ;;  %v693_v43 = vmul.f32 %v646_v25, %v646_v25 }
 0x143   : > { %v628_v28 = vpop.f32.mrf.mxu0 }
 0x144   : > { %v647_v30 = vmul.f32 %v640_v26, %v628_v28 }
 0x146   : > { %654 = vst [vmem:[#allocation3 + $0x28] sm:$0xff] %v647_v30  ;;  %v694_v39 = vmul.f32 %v647_v30, %v647_v30  ;;  %v660_v42 = vpack.c.bf16 %v647_v30, %v646_v25 }
 0x148   : > { %v698_v44 = vpack.c.bf16 %v694_v39, %v693_v43 }
 0x14b   : > { %v631_v33 = vpop.f32.mrf.mxu0 }
 0x14c   : > { %v648_v34 = vmul.f32 %v641_v31, %v631_v33 }
 0x14e   : > { %655 = vst [vmem:[#allocation3 + $0x30] sm:$0xff] %v648_v34  ;;  %v661_v35 = vpack.c.bf16 %v648_v34, %v648_v34  ;;  %v695_v36 = vmul.f32 %v648_v34, %v648_v34 }
 0x150   : > { %v673_v37 = vsel %vm671_vm1, %v661_v35, 0  ;;  %v699_v38 = vpack.c.bf16 %v695_v36, %v695_v36 }
 0x151   : > { %679 = vmatpush.bf16.msra.mxu1 %v673_v37 }
 0x152   : > { %v703_v40 = vsel %vm671_vm1, %v699_v38, 0 }
 0x153   : > { %v633_v41 = vpop.f32.mrf.mxu0  ;;  %709 = vmatpush.bf16.msra.mxu2 %v703_v40 }
 0x155   : > { %680 = vmatpush.bf16.msra.mxu1 %v660_v42 }
 0x157   : > { %710 = vmatpush.bf16.msra.mxu2 %v698_v44 }
 0x159   : > { %681 = vmatpush.bf16.msra.mxu1 %v659_v46 }
 0x15b   : > { %711 = vmatpush.bf16.msra.mxu2 %v697_v48 }
 0x15d   : > { %682 = vmatpush.bf16.msra.mxu1 %v658_v50 }
 0x15f   : > { %712 = vmatpush.bf16.msra.mxu2 %v696_v53 }
 0x160   : > { %2052 = vmatmul.msk.bf16.vlgmr.msra.gmra.mxu1 %vm667_vm2, %v2482_v52 }
 0x162   : > { %2053 = vmatmul.msk.bf16.vlgmr.msra.gmra.mxu2 %vm667_vm2, %v2482_v52 }
 0x1dd   : > { %v684_v56 = vpop.f32.mrf.mxu1 }
 0x1de   : > { %v685_v57 = vadd.f32 %v684_v56, %v564_v54 }
 0x1e0   : > { %v3255_v59 = vmul.f32 %v722_v58, %v685_v57 }
 0x1e2   : > { %v733_v62 = vmul.f32 %v3255_v59, %v3255_v59 }
 0x1e5   : > { %v714_v61 = vpop.f32.mrf.mxu2  ;;  %v686_v63 = vpop.f32.mrf.mxu1 }
 0x1e6   : > { %v715_v0 = vadd.f32 %v714_v61, %v700_v60  ;;  %v687_v2 = vadd.f32 %v686_v63, %v565_v55 }
 0x1e8   : > { %v731_v1 = vmul.f32 %v722_v58, %v715_v0  ;;  %v3259_v8 = vmul.f32 %v727_v6, %v687_v2 }
 0x1ea   : > { %v735_v3 = vsub.f32 %v731_v1, %v733_v62  ;;  %v734_v11 = vmul.f32 %v3259_v8, %v3259_v8 }
 0x1ec   : > { %v737_v7 = vmax.f32 %v735_v3, 1e-06 }
 0x1ed   : > { %v716_v9 = vpop.f32.mrf.mxu2 }
 0x1ee   : > { %2675 = vrsqrt.f32 %v737_v7  ;;  %v717_v10 = vadd.f32 %v716_v9, %v701_v5  ;;  %vm746_vm3 = vcmp.eq.f32.partialorder %v737_v7, inf  ;;  %v749_v24 = vand.u32 2147483648, %v737_v7 }
 0x1ef   : > { %vm748_vm4 = vcmp.eq.f32.partialorder %v737_v7, 0.0 }
 0x1f0   : > { %v732_v12 = vmul.f32 %v727_v6, %v717_v10 }
 0x1f2   : > { %v736_v13 = vsub.f32 %v732_v12, %v734_v11 }
 0x1f4   : > { %v2676_v14 = vpop.eup %2675  ;;  %v738_v16 = vmax.f32 %v736_v13, 1e-06 }
 0x1f5   : > { %v740_v15 = vmul.f32 %v2676_v14, %v737_v7 }
 0x1f6   : > { %2677 = vrsqrt.f32 %v738_v16  ;;  %vm758_vm5 = vcmp.eq.f32.partialorder %v738_v16, inf  ;;  %v761_v34 = vand.u32 2147483648, %v738_v16  ;;  %vm760_vm6 = vcmp.eq.f32.partialorder %v738_v16, 0.0 }
 0x1f7   : > { %v741_v17 = vmul.f32 %v2676_v14, %v740_v15 }
 0x1f9   : > { %v742_v18 = vmul.f32 0.5, %v741_v17 }
 0x1fb   : > { %v743_v19 = vsub.f32 1.5, %v742_v18 }
 0x1fc   : > { %v2678_v20 = vpop.eup %2677 }
 0x1fd   : > { %v744_v21 = vmul.f32 %v2676_v14, %v743_v19  ;;  %v752_v22 = vmul.f32 %v2678_v20, %v738_v16 }
 0x1ff   : > { %v745_v23 = vmul.f32 %v744_v21, %v737_v7  ;;  %v753_v25 = vmul.f32 %v2678_v20, %v752_v22 }
 0x201   : > { %v747_v26 = vsel %vm746_vm3, %v737_v7, %v745_v23  ;;  %v754_v29 = vmul.f32 0.5, %v753_v25 }
 0x202   : > { %v3263_v28 = vsel %vm748_vm4, %v749_v24, %v747_v26 }
 0x203   : > { %v755_v30 = vsub.f32 1.5, %v754_v29 }
 0x205   : > { %v756_v31 = vmul.f32 %v2678_v20, %v755_v30 }
 0x207   : > { %v757_v33 = vmul.f32 %v756_v31, %v738_v16 }
 0x209   : > { %v759_v35 = vsel %vm758_vm5, %v738_v16, %v757_v33 }
 0x20a   : > { %v3265_v36 = vsel %vm760_vm6, %v761_v34, %v759_v35 }
 0x20b LB: >> { %s773_s28 = sld [smem:[#allocation7 + %s2929_s23]]  ;;  %s774_s27 = scalar_lea.vmem [#allocation3], %s2929_s23  ;;  %s2929_s23 = sphi %s2927_s23, %s772_s23  }
 0x20c   : >> { %v775_v37 = vld [vmem:[%s774_s27] sm:$0x1]  ;;  %s772_s23 = sadd.s32 1, %s2929_s23  }
 0x20d   : >> { %p769_p7 = scmp.ge.s32.totalorder %s772_s23, 56  }
 0x20e   : > { %v2498_v42 = vld [vmem:[%s3187_s21 + $0x38] sm:$0xff] (%p769_p7)  ;;  %v2497_v44 = vld [vmem:[%s3187_s21 + $0x30] sm:$0xff] (%p769_p7)  ;;  %v2496_v49 = vld [vmem:[%s3187_s21 + $0x28] sm:$0xff] (%p769_p7)  ;;  %v3301_v15 = vpack.c.bf16 (%p769_p7), %v3259_v8, %v3255_v59  ;;  %p2470_p5 = scmp.ne.s32.totalorder (%p769_p7), %s3024_s24, 1 }
 0x20f   : > { %v2514_v43 = vld [vmem:[%s3187_s21 + $0xb8] sm:$0xff] (%p769_p7)  ;;  %1064 = vmatpush.bf16.msra.mxu3 (%p769_p7), %v2498_v42  ;;  %v2513_v45 = vld [vmem:[%s3187_s21 + $0xb0] sm:$0xff] (%p769_p7)  ;;  %v2512_v51 = vld [vmem:[%s3187_s21 + $0xa8] sm:$0xff] (%p769_p7) }
 0x210   : > { %1092 = vmatpush.bf16.msrb.mxu2 (%p769_p7), %v2514_v43  ;;  %v2506_v46 = vld [vmem:[%s3187_s21 + $0x78] sm:$0xff] (%p769_p7)  ;;  %v2505_v48 = vld [vmem:[%s3187_s21 + $0x70] sm:$0xff] (%p769_p7)  ;;  %v2504_v52 = vld [vmem:[%s3187_s21 + $0x68] sm:$0xff] (%p769_p7) }
 0x211   : >> { %s776_s12 = scalar_lea.vmem [#allocation4], %s773_s28  ;;  %s780_s8 = scalar_lea.vmem [#allocation5], %s773_s28  ;;  %v2490_v47 = vld [vmem:[%s3181_s6 + $0x38] sm:$0xff] (%p769_p7)  ;;  %1078 = vmatpush.bf16.msrb.mxu1 (%p769_p7), %v2506_v46  ;;  %v2489_v50 = vld [vmem:[%s3181_s6 + $0x30] sm:$0xff] (%p769_p7)  ;;  %v2495_v53 = vld [vmem:[%s3187_s21 + $0x20] sm:$0xff] (%p769_p7) }
 0x212   : >> { %v777_v38 = vld [vmem:[%s776_s12] sm:$0x1]  ;;  %771 = sbr.rel (!%p769_p7) target bundleno = 523 (0x20b), region = 166  ;;  %1168 = vmatpush.bf16.msrb.mxu0 (%p769_p7), %v2490_v47  ;;  %v2511_v55 = vld [vmem:[%s3187_s21 + $0xa0] sm:$0xff] (%p769_p7)  ;;  %v2494_v57 = vld [vmem:[%s3187_s21 + $0x18] sm:$0xff] (%p769_p7) }
 0x213   : >> { %v781_v39 = vld [vmem:[%s780_s8] sm:$0x1]  ;;  %v778_v40 = vmax.f32 %v777_v38, %v775_v37  ;;  %1065 = vmatpush.bf16.msra.mxu3 (%p769_p7), %v2497_v44  ;;  %v2503_v56 = vld [vmem:[%s3187_s21 + $0x60] sm:$0xff] (%p769_p7)  ;;  %v2510_v60 = vld [vmem:[%s3187_s21 + $0x98] sm:$0xff] (%p769_p7) }
 0x214   : >> { %v782_v41 = vmin.f32 %v781_v39, %v775_v37  ;;  %1093 = vmatpush.bf16.msrb.mxu2 (%p769_p7), %v2513_v45  ;;  %v2488_v54 = vld [vmem:[%s3181_s6 + $0x28] sm:$0xff] (%p769_p7)  ;;  %v2487_v58 = vld [vmem:[%s3181_s6 + $0x20] sm:$0xff] (%p769_p7)  ;;  %v2502_v61 = vld [vmem:[%s3187_s21 + $0x58] sm:$0xff] (%p769_p7) }
 0x215   : >> { %779 = vst [vmem:[%s776_s12] sm:$0x1] %v778_v40  ;;  %1079 = vmatpush.bf16.msrb.mxu1 (%p769_p7), %v2505_v48  ;;  %v2493_v62 = vld [vmem:[%s3187_s21 + $0x10] sm:$0xff] (%p769_p7)  ;;  %v2486_v63 = vld [vmem:[%s3181_s6 + $0x18] sm:$0xff] (%p769_p7)  ;;  %v2492_v2 = vld [vmem:[%s3187_s21 + $0x8] sm:$0xff] (%p769_p7) }
 0x216   : >> { %783 = vst [vmem:[%s780_s8] sm:$0x1] %v782_v41  ;;  %1169 = vmatpush.bf16.msrb.mxu0 (%p769_p7), %v2489_v50  ;;  %v2509_v0 = vld [vmem:[%s3187_s21 + $0x90] sm:$0xff] (%p769_p7)  ;;  %v2508_v5 = vld [vmem:[%s3187_s21 + $0x88] sm:$0xff] (%p769_p7)  ;;  %v2491_v7 = vld [vmem:[%s3187_s21] sm:$0xff] (%p769_p7) }
 0x217   : > { %1066 = vmatpush.bf16.msra.mxu3 %v2496_v49  ;;  %v2501_v1 = vld [vmem:[%s3187_s21 + $0x50] sm:$0xff]  ;;  %v2500_v6 = vld [vmem:[%s3187_s21 + $0x48] sm:$0xff]  ;;  %v2522_v9 = vld [vmem:[%s3187_s21 + $0xf8] sm:$0xff] }
 0x218   : > { %1094 = vmatpush.bf16.msrb.mxu2 %v2512_v51  ;;  %v2485_v3 = vld [vmem:[%s3181_s6 + $0x10] sm:$0xff]  ;;  %v2484_v10 = vld [vmem:[%s3181_s6 + $0x8] sm:$0xff]  ;;  %v2507_v11 = vld [vmem:[%s3187_s21 + $0x80] sm:$0xff] }
 0x219   : > { %1080 = vmatpush.bf16.msrb.mxu1 %v2504_v52  ;;  %v2538_v14 = vld [vmem:[%s3189_s18 + $0x78] sm:$0xff]  ;;  %v2499_v16 = vld [vmem:[%s3187_s21 + $0x40] sm:$0xff]  ;;  %v2521_v21 = vld [vmem:[%s3187_s21 + $0xf0] sm:$0xff] }
 0x21a   : > { %1170 = vmatpush.bf16.msrb.mxu0 %v2488_v54  ;;  %v2530_v20 = vld [vmem:[%s3189_s18 + $0x38] sm:$0xff]  ;;  %v2483_v22 = vld [vmem:[%s3181_s6] sm:$0xff]  ;;  %v2537_v59 = vld [vmem:[%s3189_s18 + $0x70] sm:$0xff] }
 0x21b   : > { %1067 = vmatpush.bf16.msra.mxu3 %v2495_v53  ;;  %v2554_v23 = vld [vmem:[%s3189_s18 + $0xf8] sm:$0xff]  ;;  %v2529_v24 = vld [vmem:[%s3189_s18 + $0x30] sm:$0xff]  ;;  %v2520_v25 = vld [vmem:[%s3187_s21 + $0xe8] sm:$0xff]  ;;  %v3345_v53 = vpack.c.bf16 %v3265_v36, %v3263_v28 }
 0x21c   : > { %1095 = vmatpush.bf16.msrb.mxu2 %v2511_v55  ;;  %v784_v17 = vld [vmem:[#allocation4] sm:$0xff]  ;;  %v785_v18 = vld [vmem:[#allocation4 + $0x8] sm:$0xff]  ;;  %v2536_v26 = vld [vmem:[%s3189_s18 + $0x68] sm:$0xff] }
 0x21d   : > { %1081 = vmatpush.bf16.msrb.mxu1 %v2503_v56  ;;  %v786_v12 = vld [vmem:[#allocation5] sm:$0xff]  ;;  %v787_v13 = vld [vmem:[#allocation5 + $0x8] sm:$0xff]  ;;  %v3310_v8 = vpack.c.bf16 %v785_v18, %v784_v17  ;;  %v2553_v29 = vld [vmem:[%s3189_s18 + $0xf0] sm:$0xff] }
 0x21e   : > { %1171 = vmatpush.bf16.msrb.mxu0 %v2487_v58  ;;  %v3304_v19 = vpack.c.bf16 %v787_v13, %v786_v12  ;;  %v2528_v30 = vld [vmem:[%s3189_s18 + $0x28] sm:$0xff]  ;;  %v2519_v31 = vld [vmem:[%s3187_s21 + $0xe0] sm:$0xff]  ;;  %v2518_v37 = vld [vmem:[%s3187_s21 + $0xd8] sm:$0xff]  ;;  %v2937_v13 = vmov 1  }
 0x21f   : > { %1068 = vmatpush.bf16.msra.mxu3 %v2494_v57  ;;  %v2535_v33 = vld [vmem:[%s3189_s18 + $0x60] sm:$0xff]  ;;  %v2552_v34 = vld [vmem:[%s3189_s18 + $0xe8] sm:$0xff]  ;;  %v2534_v38 = vld [vmem:[%s3189_s18 + $0x58] sm:$0xff]  ;;  %2679 = vset.pattern.permute.xlu0 %v2937_v13 }
 0x220   : > { %1096 = vmatpush.bf16.msrb.mxu2 %v2510_v60  ;;  %v2527_v35 = vld [vmem:[%s3189_s18 + $0x20] sm:$0xff]  ;;  %v2526_v39 = vld [vmem:[%s3189_s18 + $0x18] sm:$0xff]  ;;  %v2517_v40 = vld [vmem:[%s3187_s21 + $0xd0] sm:$0xff]  ;;  %1495 = vperm.xlu0 %2679, %v3236_v27  }
 0x221   : > { %1082 = vmatpush.bf16.msrb.mxu1 %v2502_v61  ;;  %v2533_v41 = vld [vmem:[%s3189_s18 + $0x50] sm:$0xff]  ;;  %v2550_v42 = vld [vmem:[%s3189_s18 + $0xd8] sm:$0xff]  ;;  %v2516_v44 = vld [vmem:[%s3187_s21 + $0xc8] sm:$0xff] }
 0x222   : > { %1172 = vmatpush.bf16.msrb.mxu0 %v2486_v63  ;;  %v2525_v43 = vld [vmem:[%s3189_s18 + $0x10] sm:$0xff]  ;;  %v2532_v45 = vld [vmem:[%s3189_s18 + $0x48] sm:$0xff]  ;;  %v2515_v48 = vld [vmem:[%s3187_s21 + $0xc0] sm:$0xff] }
 0x223   : > { %1069 = vmatpush.bf16.msra.mxu3 %v2493_v62  ;;  %v2549_v46 = vld [vmem:[%s3189_s18 + $0xd0] sm:$0xff]  ;;  %v2524_v47 = vld [vmem:[%s3189_s18 + $0x8] sm:$0xff]  ;;  %v2546_v49 = vld [vmem:[%s3189_s18 + $0xb8] sm:$0xff] }
 0x224   : > { %1097 = vmatpush.bf16.msrb.mxu2 %v2509_v0  ;;  %v2531_v50 = vld [vmem:[%s3189_s18 + $0x40] sm:$0xff]  ;;  %v2570_v51 = vld [vmem:[%s3203_s25 + $0x78] sm:$0xff]  ;;  %v2548_v52 = vld [vmem:[%s3189_s18 + $0xc8] sm:$0xff] }
 0x225   : > { %1083 = vmatpush.bf16.msrb.mxu1 %v2501_v1  ;;  %v2523_v54 = vld [vmem:[%s3189_s18] sm:$0xff]  ;;  %v2562_v55 = vld [vmem:[%s3203_s25 + $0x38] sm:$0xff]  ;;  %v2545_v56 = vld [vmem:[%s3189_s18 + $0xb0] sm:$0xff] }
 0x226   : > { %1173 = vmatpush.bf16.msrb.mxu0 %v2485_v3  ;;  %v2569_v57 = vld [vmem:[%s3203_s25 + $0x70] sm:$0xff]  ;;  %v2547_v58 = vld [vmem:[%s3189_s18 + $0xc0] sm:$0xff]  ;;  %v2586_v28 = vld [vmem:[%s3203_s25 + $0xf8] sm:$0xff] }
 0x227   : > { %1070 = vmatpush.bf16.msra.mxu3 %v2492_v2  ;;  %v2561_v36 = vld [vmem:[%s3203_s25 + $0x30] sm:$0xff]  ;;  %v2544_v60 = vld [vmem:[%s3189_s18 + $0xa8] sm:$0xff]  ;;  %v2543_v0 = vld [vmem:[%s3189_s18 + $0xa0] sm:$0xff] }
 0x228   : > { %1098 = vmatpush.bf16.msrb.mxu2 %v2508_v5  ;;  %v2568_v61 = vld [vmem:[%s3203_s25 + $0x68] sm:$0xff]  ;;  %v2585_v62 = vld [vmem:[%s3203_s25 + $0xf0] sm:$0xff]  ;;  %v2567_v1 = vld [vmem:[%s3203_s25 + $0x60] sm:$0xff]  ;;  %1499 = vperm.xlu0 %2679, %v3243_v32  }
 0x229   : > { %1084 = vmatpush.bf16.msrb.mxu1 %v2500_v6  ;;  %v2560_v63 = vld [vmem:[%s3203_s25 + $0x28] sm:$0xff]  ;;  %v2559_v3 = vld [vmem:[%s3203_s25 + $0x20] sm:$0xff]  ;;  %v2542_v5 = vld [vmem:[%s3189_s18 + $0x98] sm:$0xff] }
 0x22a   : > { %1174 = vmatpush.bf16.msrb.mxu0 %v2484_v10  ;;  %v2584_v2 = vld [vmem:[%s3203_s25 + $0xe8] sm:$0xff]  ;;  %v2566_v6 = vld [vmem:[%s3203_s25 + $0x58] sm:$0xff]  ;;  %v2541_v10 = vld [vmem:[%s3189_s18 + $0x90] sm:$0xff] }
 0x22b   : > { %1071 = vmatpush.bf16.msra.mxu3 %v2491_v7  ;;  %v2583_v7 = vld [vmem:[%s3203_s25 + $0xe0] sm:$0xff]  ;;  %v2582_v12 = vld [vmem:[%s3203_s25 + $0xd8] sm:$0xff]  ;;  %v2564_v17 = vld [vmem:[%s3203_s25 + $0x48] sm:$0xff] }
 0x22c   : > { %1099 = vmatpush.bf16.msrb.mxu2 %v2507_v11  ;;  %v2565_v11 = vld [vmem:[%s3203_s25 + $0x50] sm:$0xff]  ;;  %v2682_v13 = vld [vmem:[%s552_s16] ss:$0 sm:$0xff] }
 0x22d   : > { %1085 = vmatpush.bf16.msrb.mxu1 %v2499_v16  ;;  %v2540_v16 = vld [vmem:[%s3189_s18 + $0x88] sm:$0xff]  ;;  %v2581_v18 = vld [vmem:[%s3203_s25 + $0xd0] sm:$0xff] }
 0x22e   : > { %1072 = vmatmul.bf16.vlgmr.msra.gmra.mxu3 %v3301_v15  ;;  %1175 = vmatpush.bf16.msrb.mxu0 %v2483_v22  ;;  %v2578_v22 = vld [vmem:[%s3203_s25 + $0xb8] sm:$0xff] }
 0x22f   : > { %1106 = vmatpush.bf16.msrb.mxu3 %v2522_v9  ;;  %1100 = vmatmul.bf16.vlgmr.msrb.gmra.mxu2 %v3304_v19  ;;  %v2558_v9 = vld [vmem:[%s3203_s25 + $0x18] sm:$0xff] }
 0x230   : > { %1452 = vmatpush.bf16.msra.mxu2 %v2538_v14  ;;  %1086 = vmatmul.bf16.vlgmr.msrb.gmra.mxu1 %v3310_v8  ;;  %v2557_v14 = vld [vmem:[%s3203_s25 + $0x10] sm:$0xff] }
 0x231   : > { %1438 = vmatpush.bf16.msra.mxu1 %v2530_v20  ;;  %1176 = vmatmul.bf16.vlgmr.msrb.gmra.mxu0 %v3212_v4  ;;  %v2551_v4 = vld [vmem:[%s3189_s18 + $0xe0] sm:$0xff]  ;;  %v2556_v20 = vld [vmem:[%s3203_s25 + $0x8] sm:$0xff] }
 0x232   : > { %1480 = vmatpush.bf16.msra.mxu0 %v2554_v23  ;;  %v2580_v23 = vld [vmem:[%s3203_s25 + $0xc8] sm:$0xff] }
 0x233   : > { %1107 = vmatpush.bf16.msrb.mxu3 %v2521_v21  ;;  %v2539_v21 = vld [vmem:[%s3189_s18 + $0x80] sm:$0xff] }
 0x234   : > { %1453 = vmatpush.bf16.msra.mxu2 %v2537_v59  ;;  %v2563_v59 = vld [vmem:[%s3203_s25 + $0x40] sm:$0xff] }
 0x235   : > { %1439 = vmatpush.bf16.msra.mxu1 %v2529_v24  ;;  %v2555_v24 = vld [vmem:[%s3203_s25] sm:$0xff] }
 0x236   : > { %1481 = vmatpush.bf16.msra.mxu0 %v2553_v29  ;;  %v2938_v29 = vmov 2  }
 0x237   : > { %1108 = vmatpush.bf16.msrb.mxu3 %v2520_v25  ;;  %v2577_v25 = vld [vmem:[%s3203_s25 + $0xb0] sm:$0xff]  ;;  %2680 = vset.pattern.permute.xlu1 %v2938_v29 }
 0x238   : > { %1454 = vmatpush.bf16.msra.mxu2 %v2536_v26  ;;  %v2579_v26 = vld [vmem:[%s3203_s25 + $0xc0] sm:$0xff]  ;;  %1819 = vperm.xlu1 %2680, %v3236_v27  }
 0x239   : > { %1440 = vmatpush.bf16.msra.mxu1 %v2528_v30  ;;  %v2576_v30 = vld [vmem:[%s3203_s25 + $0xa8] sm:$0xff]  ;;  %2681 = vset.pattern.permute.xlu0 %v2938_v29  ;;  %v2571_v27 = vld [vmem:[%s3203_s25 + $0x80] sm:$0xff] }
 0x23a   : > { %1482 = vmatpush.bf16.msra.mxu0 %v2552_v34  ;;  %v2572_v34 = vld [vmem:[%s3203_s25 + $0x88] sm:$0xff] }
 0x23b   : > { %1109 = vmatpush.bf16.msrb.mxu3 %v2519_v31  ;;  %v2575_v31 = vld [vmem:[%s3203_s25 + $0xa0] sm:$0xff] }
 0x23c   : > { %1455 = vmatpush.bf16.msra.mxu2 %v2535_v33  ;;  %v2574_v33 = vld [vmem:[%s3203_s25 + $0x98] sm:$0xff] }
 0x23d   : > { %1441 = vmatpush.bf16.msra.mxu1 %v2527_v35 }
 0x23e   : > { %1483 = vmatpush.bf16.msra.mxu0 %v2551_v4 }
 0x23f   : > { %1110 = vmatpush.bf16.msrb.mxu3 %v2518_v37 }
 0x240   : > { %1456 = vmatpush.bf16.msra.mxu2 %v2534_v38  ;;  %1823 = vperm.xlu1 %2680, %v3243_v32  }
 0x241   : > { %1442 = vmatpush.bf16.msra.mxu1 %v2526_v39 }
 0x242   : > { %1484 = vmatpush.bf16.msra.mxu0 %v2550_v42 }
 0x243   : > { %1111 = vmatpush.bf16.msrb.mxu3 %v2517_v40 }
 0x244   : > { %1457 = vmatpush.bf16.msra.mxu2 %v2533_v41 }
 0x245   : > { %1443 = vmatpush.bf16.msra.mxu1 %v2525_v43 }
 0x246   : > { %1485 = vmatpush.bf16.msra.mxu0 %v2549_v46 }
 0x247   : > { %1112 = vmatpush.bf16.msrb.mxu3 %v2516_v44 }
 0x248   : > { %1458 = vmatpush.bf16.msra.mxu2 %v2532_v45 }
 0x249   : > { %1444 = vmatpush.bf16.msra.mxu1 %v2524_v47 }
 0x24a   : > { %1486 = vmatpush.bf16.msra.mxu0 %v2548_v52 }
 0x24b   : > { %1113 = vmatpush.bf16.msrb.mxu3 %v2515_v48 }
 0x24c   : > { %1459 = vmatpush.bf16.msra.mxu2 %v2531_v50 }
 0x24d   : > { %1445 = vmatpush.bf16.msra.mxu1 %v2523_v54 }
 0x24e   : > { %1114 = vmatmul.bf16.vlgmr.msrb.gmra.mxu3 %v3345_v53  ;;  %1487 = vmatpush.bf16.msra.mxu0 %v2547_v58 }
 0x24f   : > { %1466 = vmatpush.bf16.msra.mxu3 %v2546_v49  ;;  %1460 = vmatmul.bf16.vlgmr.msra.gmra.mxu2 %v3310_v8 }
 0x250   : > { %1776 = vmatpush.bf16.msrb.mxu2 %v2570_v51  ;;  %1446 = vmatmul.bf16.vlgmr.msra.gmra.mxu1 %v3301_v15 }
 0x251   : > { %1762 = vmatpush.bf16.msrb.mxu1 %v2562_v55  ;;  %1488 = vmatmul.bf16.vlgmr.msra.gmra.mxu0 %v3345_v53 }
 0x252   : > { %1804 = vmatpush.bf16.msrb.mxu0 %v2586_v28 }
 0x253   : > { %1467 = vmatpush.bf16.msra.mxu3 %v2545_v56 }
 0x254   : > { %1777 = vmatpush.bf16.msrb.mxu2 %v2569_v57 }
 0x255   : > { %1763 = vmatpush.bf16.msrb.mxu1 %v2561_v36 }
 0x256   : > { %1805 = vmatpush.bf16.msrb.mxu0 %v2585_v62 }
 0x257   : > { %1468 = vmatpush.bf16.msra.mxu3 %v2544_v60 }
 0x258   : > { %1778 = vmatpush.bf16.msrb.mxu2 %v2568_v61 }
 0x259   : > { %1764 = vmatpush.bf16.msrb.mxu1 %v2560_v63 }
 0x25a   : > { %1806 = vmatpush.bf16.msrb.mxu0 %v2584_v2 }
 0x25b   : > { %1469 = vmatpush.bf16.msra.mxu3 %v2543_v0 }
 0x25c   : > { %1779 = vmatpush.bf16.msrb.mxu2 %v2567_v1 }
 0x25d   : > { %1765 = vmatpush.bf16.msrb.mxu1 %v2559_v3 }
 0x25e   : > { %1807 = vmatpush.bf16.msrb.mxu0 %v2583_v7 }
 0x25f   : > { %1470 = vmatpush.bf16.msra.mxu3 %v2542_v5 }
 0x260   : > { %1780 = vmatpush.bf16.msrb.mxu2 %v2566_v6 }
 0x261   : > { %1766 = vmatpush.bf16.msrb.mxu1 %v2558_v9 }
 0x262   : > { %1808 = vmatpush.bf16.msrb.mxu0 %v2582_v12 }
 0x263   : > { %1471 = vmatpush.bf16.msra.mxu3 %v2541_v10 }
 0x264   : > { %1781 = vmatpush.bf16.msrb.mxu2 %v2565_v11 }
 0x265   : > { %1767 = vmatpush.bf16.msrb.mxu1 %v2557_v14 }
 0x266   : > { %1809 = vmatpush.bf16.msrb.mxu0 %v2581_v18 }
 0x267   : > { %1472 = vmatpush.bf16.msra.mxu3 %v2540_v16 }
 0x268   : > { %1782 = vmatpush.bf16.msrb.mxu2 %v2564_v17 }
 0x269   : > { %1768 = vmatpush.bf16.msrb.mxu1 %v2556_v20 }
 0x26a   : > { %1810 = vmatpush.bf16.msrb.mxu0 %v2580_v23 }
 0x26b   : > { %1473 = vmatpush.bf16.msra.mxu3 %v2539_v21 }
 0x26c   : > { %1783 = vmatpush.bf16.msrb.mxu2 %v2563_v59 }
 0x26d   : > { %1769 = vmatpush.bf16.msrb.mxu1 %v2555_v24 }
 0x26e   : > { %1474 = vmatmul.bf16.vlgmr.msra.gmra.mxu3 %v3304_v19  ;;  %1811 = vmatpush.bf16.msrb.mxu0 %v2579_v26 }
 0x26f   : > { %1790 = vmatpush.bf16.msrb.mxu3 %v2578_v22  ;;  %1784 = vmatmul.bf16.vlgmr.msrb.gmra.mxu2 %v3310_v8  ;;  %v2573_v8 = vld [vmem:[%s3203_s25 + $0x90] sm:$0xff] }
 0x270   : > { %1770 = vmatmul.bf16.vlgmr.msrb.gmra.mxu1 %v3301_v15 }
 0x271   : > { %1812 = vmatmul.bf16.vlgmr.msrb.gmra.mxu0 %v3345_v53 }
 0x273   : > { %1791 = vmatpush.bf16.msrb.mxu3 %v2577_v25 }
 0x277   : > { %1792 = vmatpush.bf16.msrb.mxu3 %v2576_v30 }
 0x27b   : > { %1793 = vmatpush.bf16.msrb.mxu3 %v2575_v31 }
 0x27f   : > { %1794 = vmatpush.bf16.msrb.mxu3 %v2574_v33 }
 0x283   : > { %1795 = vmatpush.bf16.msrb.mxu3 %v2573_v8 }
 0x287   : > { %1796 = vmatpush.bf16.msrb.mxu3 %v2572_v34 }
 0x28b   : > { %1797 = vmatpush.bf16.msrb.mxu3 %v2571_v27 }
 0x28e   : > { %1798 = vmatmul.bf16.vlgmr.msrb.gmra.mxu3 %v3304_v19 }
 0x292   : > { %v1496_v56 = vpop.permute.xlu0 %1495 }
 0x29a   : > { %v1500_v14 = vpop.permute.xlu0 %1499 }
 0x2aa   : > { %v1820_v2 = vpop.permute.xlu1 %1819 }
 0x2ad   : > { %v1087_v37 = vpop.f32.mrf.mxu1 }
 0x2ae   : > { %v1177_v39 = vpop.f32.mrf.mxu0 }
 0x2b1   : > { %v1073_v15 = vpop.f32.mrf.mxu3 }
 0x2b2   : > { %v1101_v38 = vpop.f32.mrf.mxu2  ;;  %v1088_v50 = vadd.f32 %v1087_v37, %v1073_v15  ;;  %v1824_v29 = vpop.permute.xlu1 %1823 }
 0x2b4   : > { %v1102_v55 = vadd.f32 %v1101_v38, %v1088_v50 }
 0x2b5   : > { %v1089_v40 = vpop.f32.mrf.mxu1 }
 0x2b6   : > { %v1179_v42 = vpop.f32.mrf.mxu0 }
 0x2b9   : > { %v1075_v35 = vpop.f32.mrf.mxu3 }
 0x2ba   : > { %v1103_v41 = vpop.f32.mrf.mxu2  ;;  %v1090_v62 = vadd.f32 %v1089_v40, %v1075_v35 }
 0x2bc   : > { %v1104_v9 = vadd.f32 %v1103_v41, %v1090_v62 }
 0x2cd   : > { %v1447_v43 = vpop.f32.mrf.mxu1 }
 0x2ce   : > { %v1489_v46 = vpop.f32.mrf.mxu0 }
 0x2d1   : > { %v1115_v4 = vpop.f32.mrf.mxu3 }
 0x2d2   : > { %v1461_v44 = vpop.f32.mrf.mxu2  ;;  %v1116_v36 = vadd.f32 %v1115_v4, %v1102_v55 }
 0x2d3   : > { %v1462_v49 = vadd.f32 %v1461_v44, %v1447_v43 }
 0x2d4   : > { %v1178_v3 = vadd.f32 %v1177_v39, %v1116_v36 }
 0x2d5   : > { %v1449_v47 = vpop.f32.mrf.mxu1 }
 0x2d6   : > { %v1491_v19 = vpop.f32.mrf.mxu0 }
 0x2d9   : > { %v1117_v32 = vpop.f32.mrf.mxu3 }
 0x2da   : > { %v1463_v48 = vpop.f32.mrf.mxu2  ;;  %v1118_v16 = vadd.f32 %v1117_v32, %v1104_v9 }
 0x2db   : > { %v1464_v58 = vadd.f32 %v1463_v48, %v1449_v47 }
 0x2dc   : > { %v1180_v24 = vadd.f32 %v1179_v42, %v1118_v16 }
 0x2ed   : > { %v1771_v53 = vpop.f32.mrf.mxu1 }
 0x2ee   : > { %v1813_v60 = vpop.f32.mrf.mxu0 }
 0x2f1   : > { %v1475_v45 = vpop.f32.mrf.mxu3 }
 0x2f2   : > { %v1476_v52 = vadd.f32 %v1475_v45, %v1462_v49  ;;  %v1785_v54 = vpop.f32.mrf.mxu2 }
 0x2f3   : > { %v1786_v28 = vadd.f32 %v1785_v54, %v1771_v53 }
 0x2f4   : > { %v1490_v57 = vadd.f32 %v1489_v46, %v1476_v52 }
 0x2f5   : > { %v1773_v6 = vpop.f32.mrf.mxu1 }
 0x2f6   : > { %v1502_v63 = vmul.f32 %v1496_v56, %v1490_v57  ;;  %v1815_v23 = vpop.f32.mrf.mxu0 }
 0x2f8   : > { %v1504_v10 = vadd.f32 %v1502_v63, %v1178_v3 }
 0x2f9   : > { %v1477_v51 = vpop.f32.mrf.mxu3 }
 0x2fa   : > { %v1478_v0 = vadd.f32 %v1477_v51, %v1464_v58  ;;  %v1787_v7 = vpop.f32.mrf.mxu2 }
 0x2fb   : > { %v1788_v17 = vadd.f32 %v1787_v7, %v1773_v6 }
 0x2fc   : > { %v1492_v11 = vadd.f32 %v1491_v19, %v1478_v0 }
 0x2fe   : > { %v1503_v21 = vmul.f32 %v1500_v14, %v1492_v11 }
 0x300   : > { %v1505_v30 = vadd.f32 %v1503_v21, %v1180_v24 }
 0x311   : > { %v1799_v61 = vpop.f32.mrf.mxu3 }
 0x312   : > { %v1800_v1 = vadd.f32 %v1799_v61, %v1786_v28 }
 0x314   : > { %v1814_v5 = vadd.f32 %v1813_v60, %v1800_v1 }
 0x316   : > { %v1826_v12 = vmul.f32 %v1820_v2, %v1814_v5 }
 0x318   : > { %v1828_v18 = vadd.f32 %v1826_v12, %v1504_v10 }
 0x319   : > { %v1801_v20 = vpop.f32.mrf.mxu3 }
 0x31a   : > { %v1834_v22 = vadd.f32 %v2682_v13, %v1828_v18  ;;  %v1802_v59 = vadd.f32 %v1801_v20, %v1788_v17 }
 0x31c   : > { %v1836_v25 = vmax.f32 %v1834_v22, 0.0  ;;  %v1816_v26 = vadd.f32 %v1815_v23, %v1802_v59 }
 0x31e   : > { %1838 = vst [vmem:[#allocation2] sm:$0xff] %v1836_v25  ;;  %v1827_v31 = vmul.f32 %v1824_v29, %v1816_v26 }
 0x320   : > { %v1829_v33 = vadd.f32 %v1827_v31, %v1505_v30 }
 0x322   : > { %v1835_v8 = vadd.f32 %v2682_v13, %v1829_v33  ;;  %1843 = sbr.rel (%p2470_p5) target bundleno = 809 (0x329), region = 95 }
 0x324   : > { %v1837_v34 = vmax.f32 %v1835_v8, 0.0 }
 0x326   : > { %1839 = vst [vmem:[#allocation2 + $0x8] sm:$0xff] %v1837_v34 }
 0x327   : > { %1844 = vst [vmem:[#allocation17] sm:$0xff] %v1836_v25 }
 0x328   : > { %1845 = vst [vmem:[#allocation17 + $0x8] sm:$0xff] %v1837_v34 }
 0x329 PF: > { %p2621_p3 = scmp.eq.s32.totalorder %s3024_s24, 1  ;;  %s2939_s4 = smov [#allocation17]  }
 0x32a   : > { %s1851_s16 = sshll.u32 %s2939_s4, 4  ;;  %s3474_s14 = sld [smem:[#allocation33_spill]]  ;;  %s1852_s16 = int_to_ptr.vmem [resolvable:$true] %s1851_s16 }
 0x32b   : > { %s2940_s3 = smov 128   ;;  %s2941_s11 = smov 8  }
 0x330   : > { %s1853_s15 = sshll.u32 %s3474_s14, 4  ;;  %s1854_s15 = int_to_ptr.hbm [resolvable:$true] %s1853_s15 }
 0x331   : > { %2601 = dma.vmem_to_hbm [thread:$0]  (%p2621_p3), %s1852_s16, 256, %s1854_s15, [#allocation10], %s2940_s3, %s2940_s3, %s2941_s11  }
 0x332   : > { %2908 = dma.done.wait (%p2621_p3), [#allocation10], 256  }
 0x333   : > { %2910 = vsyncadd (%p2621_p3), [#allocation10], 4294967040 }
 0x334 PF: > { %s3475_s0 = sld [smem:[#allocation24_spill]]  ;;  %s3478_s21 = smov %s2917_s22 }
 0x335   : > { %s3476_s13 = sld [smem:[#allocation23_spill]] }
 0x336   : > { %s3477_s23 = sld [smem:[#allocation25_spill]] }
 0x33a   : > { %p36_p4 = scmp.ge.s32.totalorder %s3475_s0, 4  }
 0x33b   : > { %s3479_s22 = smov %s3476_s13 }
 0x33c   :  { %38 = sbr.rel (!%p36_p4) target bundleno = 21 (0x15), region = 177 }
 0x341   :  { %1870 = vsyncpa [#allocation9], 1 }
 0x342   :  { %1872 = vsyncpa [#allocation9 + $0x1], 1 }
 0x343   :  { %1873 = vsyncpa [#allocation12], 1 }
 0x344   :  { %1875 = vsyncpa [#allocation12 + $0x1], 1 }
 0x345   :  { %1876 = vsyncpa [#allocation15], 1 }
 0x346   :  { %1878 = vsyncpa [#allocation15 + $0x1], 1 }
 0x347   :  { %1879 = vsyncpa [#allocation10], 1 }
 0x348   :  { %1881 = vsyncpa [#allocation10 + $0x1], 1 }

</bundles_post_ra>
